<compile_context>
chip_gen: v7x
topology: tpu7x:2x2x1
jax: 0.10.0
libtpu: 0.0.40
codegen_flags: <defaults>
</compile_context>

<pallas_src>
import functools

import jax
import jax.numpy as jnp
from jax.experimental import pallas as pl
from jax.experimental.pallas import tpu as pltpu

SELU_ALPHA = 1.6732632423543772
SELU_LAMBDA = 1.0507009873554805


def _selu(x):
    # exp only sees min(x, 0): no transient inf on the discarded positive branch.
    return SELU_LAMBDA * jnp.where(x > 0, x, SELU_ALPHA * (jnp.exp(jnp.minimum(x, 0.0)) - 1.0))


# ----------------------------- in-kernel helpers ----------------------------


def _shift_lanes(a, d):
    """result[:, q] = a[:, (q + d) % Q].

    Explicit slice+concatenate along the lane axis (unambiguous semantics; lowers to cheap
    cross-lane ops).  Wrapped lanes are only ever *read* at image-border pixels, which the
    reflection selects below overwrite.
    """
    q = a.shape[-1]
    d = d % q
    if d == 0:
        return a
    return jnp.concatenate([a[:, d:], a[:, :d]], axis=1)


def _conv_reflect(a, w, b, row_idx, col_idx, *, H, W, k):
    """ReflectionPad2d(k//2) + k x k Conv2d of a lane-flattened image.

    a       : (Cin,  H*W) f32   image, column q = r*W + c
    w       : (Cout, k*k*Cin) f32  weights, column order (dy, dx, ci)
    b       : (Cout, 1) f32     bias
    row_idx : (1, H*W) int32    r per column
    col_idx : (1, H*W) int32    c per column
    returns : (Cout, H*W) f32

    Taps are built in two stages, all on lane-dense slabs and entirely in registers:
      stage 1: column shift + column reflection (lane shifts + lane-masked selects),
      stage 2: row shift (multiples of W lanes) + row reflection,
    then accumulated as (Cout,1)*(1,HW) broadcast-FMAs on the VPU (no im2col scratch, no MXU --
    at Cin=Cout=4 the MXU would run at <3% utilization and the kernel is not FLOP-bound).
    """
    Cin, HW = a.shape
    Cout = w.shape[0]
    p = k // 2

    # ---- stage 1: column-reflected shifts, one per dx ------------------------------------
    col_sh = []
    for dx in range(k):
        ox = dx - p
        t = _shift_lanes(a, ox)
        for c in range(0, -ox):                          # left border (only when ox < 0)
            refl = -(c + ox)                             # reflected source column, in (0, p]
            t = jnp.where(col_idx == c, _shift_lanes(a, refl - c), t)
        for c in range(W - ox, W):                       # right border (only when ox > 0)
            refl = 2 * (W - 1) - (c + ox)                # reflected source column
            t = jnp.where(col_idx == c, _shift_lanes(a, refl - c), t)
        col_sh.append(t)

    # ---- stage 2: row-reflected shifts, fused with the weight accumulation ---------------
    acc = jnp.zeros((Cout, HW), jnp.float32) + b         # start from bias
    for dy in range(k):
        oy = dy - p
        for dx in range(k):
            src = col_sh[dx]
            tap = _shift_lanes(src, oy * W)
            for r in range(0, -oy):                      # top border (only when oy < 0)
                refl = -(r + oy)
                tap = jnp.where(row_idx == r, _shift_lanes(src, (refl - r) * W), tap)
            for r in range(H - oy, H):                   # bottom border (only when oy > 0)
                refl = 2 * (H - 1) - (r + oy)
                tap = jnp.where(row_idx == r, _shift_lanes(src, (refl - r) * W), tap)
            j0 = (dy * k + dx) * Cin
            for ci in range(Cin):
                # (Cout,1) weight column broadcast over HW lanes  x  (1,HW) tap row.
                acc = acc + w[:, j0 + ci:j0 + ci + 1] * tap[ci:ci + 1, :]
    return acc


# ------------------------------- fused kernel -------------------------------


def _resblock_kernel(rc_ref, x_ref, w1_ref, b1_ref, w2_ref, b2_ref, o_ref, *, k, H, W, scale):
    """Fused ResBlock forward for one image, everything lane-dense on (C, H*W) slabs.

    rc_ref : (2, HW) int32   row 0 = r per column, row 1 = c per column (precomputed in wrapper)
    x_ref  : (Ci, HW) f32    input image (batch dim squeezed)
    w1_ref : (Co1, k*k*Ci) f32 / b1_ref: (Co1, 1) f32     conv1
    w2_ref : (Co2, k*k*Co1) f32 / b2_ref: (Co2, 1) f32    conv2
    o_ref  : (Co2, HW) f32   lane-dense output block
    """
    row_idx = rc_ref[0:1, :]
    col_idx = rc_ref[1:2, :]
    x = x_ref[...]                                             # (Ci, HW) f32

    # ---- Conv_W #1 -> SELU, entirely in registers ----
    y = _conv_reflect(x, w1_ref[...], b1_ref[...], row_idx, col_idx, H=H, W=W, k=k)
    y = _selu(y)

    # ---- Conv_W #2 on the intermediate activation (never leaves VMEM/vregs) ----
    r = _conv_reflect(y, w2_ref[...], b2_ref[...], row_idx, col_idx, H=H, W=W, k=k)
    if scale is not None:
        r = r * jnp.float32(scale)

    # residual add (Co2 == Ci) + final SELU: all lane-dense over HW, store is unmasked in lanes.
    o_ref[...] = _selu(r + x).astype(o_ref.dtype)


# --------------------------------- wrapper -----------------------------------


def resblock_forward(x_nchw, w1, b1, w2, b2, *, k, scale=None):
    """ResBlock forward.  x_nchw: (N, C, H, W) f32 (PyTorch convention).
    w1: (inCh, inCh, k, k), w2: (outCh, inCh, k, k) OIHW; b1/b2: (outCh,)."""
    N, Ci, H, W = x_nchw.shape
    Co1, Co2 = w1.shape[0], w2.shape[0]
    p = k // 2
    HW = H * W
    assert k % 2 == 1, "k must be odd"
    assert p < H and p < W, "ReflectionPad2d needs pad < spatial size"
    assert w1.shape[1] == Ci and Co1 == Ci and w2.shape[1] == Co1 and Co2 == Ci, \
        "ResBlock structure: conv1 is inCh->inCh and the residual add needs outCh == inCh"

    # Layout plumbing (wrapper side, no transposes of x):
    x_flat = x_nchw.reshape(N, Ci, HW).astype(jnp.float32)                 # free reshape
    # OIHW -> (Cout, k*k*Cin) with column order (dy, dx, ci), matching the in-kernel tap order.
    w1m = jnp.transpose(w1, (0, 2, 3, 1)).reshape(Co1, k * k * Ci).astype(jnp.float32)
    w2m = jnp.transpose(w2, (0, 2, 3, 1)).reshape(Co2, k * k * Co1).astype(jnp.float32)
    b1m = b1.reshape(Co1, 1).astype(jnp.float32)
    b2m = b2.reshape(Co2, 1).astype(jnp.float32)
    # Per-lane (r, c) indices for the reflection border selects (avoids in-kernel div/mod).
    rc = jnp.stack([jnp.repeat(jnp.arange(H, dtype=jnp.int32), W),
                    jnp.tile(jnp.arange(W, dtype=jnp.int32), H)], axis=0)  # (2, HW)

    flops = 2 * N * HW * k * k * (Ci * Co1 + Co1 * Co2)
    transcendentals = N * HW * (Co1 + Co2)
    bytes_accessed = ((x_flat.size + N * Co2 * HW) * 4
                      + (w1m.size + w2m.size + b1m.size + b2m.size + rc.size) * 4)

    out_flat = pl.pallas_call(
        functools.partial(_resblock_kernel, k=k, H=H, W=W, scale=scale),
        out_shape=jax.ShapeDtypeStruct((N, Co2, HW), x_nchw.dtype),
        grid_spec=pltpu.PrefetchScalarGridSpec(
            num_scalar_prefetch=0,
            grid=(N,),                                  # one image per grid step; "parallel"
            in_specs=[                                  # splits across the 2 TCs on v7x.
                pl.BlockSpec((2, HW), lambda n: (0, 0)),
                pl.BlockSpec((pl.Squeezed(), Ci, HW), lambda n: (n, 0, 0)),
                pl.BlockSpec((Co1, k * k * Ci), lambda n: (0, 0)),
                pl.BlockSpec((Co1, 1), lambda n: (0, 0)),
                pl.BlockSpec((Co2, k * k * Co1), lambda n: (0, 0)),
                pl.BlockSpec((Co2, 1), lambda n: (0, 0)),
            ],
            out_specs=pl.BlockSpec((pl.Squeezed(), Co2, HW), lambda n: (n, 0, 0)),
        ),
        compiler_params=pltpu.CompilerParams(dimension_semantics=("parallel",)),
        cost_estimate=pl.CostEstimate(flops=int(flops),
                                      transcendentals=int(transcendentals),
                                      bytes_accessed=int(bytes_accessed)),
    )(rc, x_flat, w1m, b1m, w2m, b2m)

    # (N, Co2, H*W) -> (N, Co2, H, W) is free: output is already NCHW-ordered.
    return out_flat.reshape(N, Co2, H, W)


# ------------------------- pure-JAX f32 reference ----------------------------


def _ref_forward(x, w1, b1, w2, b2, *, k, scale=None):
    p = k // 2

    def conv_w(inp, w, b):
        xp = jnp.pad(inp, ((0, 0), (0, 0), (p, p), (p, p)), mode="reflect")
        y = jax.lax.conv_general_dilated(
            xp, w, window_strides=(1, 1), padding="VALID",
            dimension_numbers=("NCHW", "OIHW", "NCHW"),
            precision=jax.lax.Precision.HIGHEST)
        return y + b[None, :, None, None]

    y = _selu(conv_w(x, w1, b1))
    r = conv_w(y, w2, b2)
    if scale is not None:
        r = r * scale
    return _selu(r + x)


# ----------------------------------- main -------------------------------------

if __name__ == "__main__":
    # ResBlock(inCh=4, outCh=4, k=3, scale=0.5); residual add requires outCh == inCh.
    N, C, H, W = 2, 4, 16, 16
    K = 3
    SCALE = 0.5

    key = jax.random.PRNGKey(0)
    kx, kw1, kb1, kw2, kb2 = jax.random.split(key, 5)

    x = jax.random.normal(kx, (N, C, H, W), dtype=jnp.float32)
    w1 = 0.1 * jax.random.normal(kw1, (C, C, K, K), dtype=jnp.float32)   # conv1: inCh->inCh
    b1 = 0.05 * jax.random.normal(kb1, (C,), dtype=jnp.float32)
    w2 = 0.1 * jax.random.normal(kw2, (C, C, K, K), dtype=jnp.float32)   # conv2: inCh->outCh
    b2 = 0.05 * jax.random.normal(kb2, (C,), dtype=jnp.float32)

    # scale=0.5 path (full f32 in-kernel compute -> tight tolerance vs the f32 reference).
    out = resblock_forward(x, w1, b1, w2, b2, k=K, scale=SCALE)
    out = jax.block_until_ready(out)
    ref = _ref_forward(x, w1, b1, w2, b2, k=K, scale=SCALE)
    assert out.shape == (N, C, H, W)
    assert jnp.allclose(out, ref, atol=2e-4, rtol=2e-4), \
        float(jnp.max(jnp.abs(out - ref)))

    # scale=None path
    out2 = resblock_forward(x, w1, b1, w2, b2, k=K, scale=None)
    out2 = jax.block_until_ready(out2)
    ref2 = _ref_forward(x, w1, b1, w2, b2, k=K, scale=None)
    assert jnp.allclose(out2, ref2, atol=2e-4, rtol=2e-4), \
        float(jnp.max(jnp.abs(out2 - ref2)))

    # k=5 path exercises the general (p=2) reflection / tap construction.
    kw5, kb5, kw6, kb6 = jax.random.split(kw2, 4)
    w1_5 = 0.05 * jax.random.normal(kw5, (C, C, 5, 5), dtype=jnp.float32)
    b1_5 = 0.05 * jax.random.normal(kb5, (C,), dtype=jnp.float32)
    w2_5 = 0.05 * jax.random.normal(kw6, (C, C, 5, 5), dtype=jnp.float32)
    b2_5 = 0.05 * jax.random.normal(kb6, (C,), dtype=jnp.float32)
    out3 = resblock_forward(x, w1_5, b1_5, w2_5, b2_5, k=5, scale=None)
    out3 = jax.block_until_ready(out3)
    ref3 = _ref_forward(x, w1_5, b1_5, w2_5, b2_5, k=5, scale=None)
    assert jnp.allclose(out3, ref3, atol=2e-4, rtol=2e-4), \
        float(jnp.max(jnp.abs(out3 - ref3)))

    print("KERNEL_OK")
</pallas_src>

<mosaic_0001>
module attributes {stable_mosaic.version = 11 : i64} {
  func.func @_resblock_kernel(%arg0: i32, %arg1: memref<2x256xi32, #tpu.memory_space<vmem>>, %arg2: memref<1x4x256xf32, #tpu.memory_space<vmem>>, %arg3: memref<4x36xf32, #tpu.memory_space<vmem>>, %arg4: memref<4x1xf32, #tpu.memory_space<vmem>>, %arg5: memref<4x36xf32, #tpu.memory_space<vmem>>, %arg6: memref<4x1xf32, #tpu.memory_space<vmem>>, %arg7: memref<1x4x256xf32, #tpu.memory_space<vmem>>) attributes {dimension_semantics = [#tpu.dimension_semantics<parallel>], iteration_bounds = array<i64: 2>, scalar_prefetch = 0 : i64, scratch_operands = 0 : i64, tpu.core_type = #tpu.core_type<tc>, window_params = [{pipeline_mode = #tpu.pipeline_mode<synchronous>, transform_indices = @transform_0, window_bounds = array<i64: 2, 256>}, {transform_indices = @transform_1, window_bounds = array<i64: 1, 4, 256>}, {pipeline_mode = #tpu.pipeline_mode<synchronous>, transform_indices = @transform_2, window_bounds = array<i64: 4, 36>}, {pipeline_mode = #tpu.pipeline_mode<synchronous>, transform_indices = @transform_3, window_bounds = array<i64: 4, 1>}, {pipeline_mode = #tpu.pipeline_mode<synchronous>, transform_indices = @transform_4, window_bounds = array<i64: 4, 36>}, {pipeline_mode = #tpu.pipeline_mode<synchronous>, transform_indices = @transform_5, window_bounds = array<i64: 4, 1>}, {transform_indices = @transform_6, window_bounds = array<i64: 1, 4, 256>}]} {
    %c0 = arith.constant 0 : index
    %c0_0 = arith.constant 0 : index
    %0 = vector.load %arg1[%c0, %c0_0] : memref<2x256xi32, #tpu.memory_space<vmem>>, vector<1x256xi32>
    %c1 = arith.constant 1 : index
    %c0_1 = arith.constant 0 : index
    %1 = vector.load %arg1[%c1, %c0_1] : memref<2x256xi32, #tpu.memory_space<vmem>>, vector<1x256xi32>
    %c0_2 = arith.constant 0 : index
    %c0_3 = arith.constant 0 : index
    %c0_4 = arith.constant 0 : index
    %2 = vector.load %arg2[%c0_2, %c0_3, %c0_4] : memref<1x4x256xf32, #tpu.memory_space<vmem>>, vector<1x4x256xf32>
    %3 = vector.shape_cast %2 : vector<1x4x256xf32> to vector<4x256xf32>
    %c0_5 = arith.constant 0 : index
    %c0_6 = arith.constant 0 : index
    %4 = vector.load %arg3[%c0_5, %c0_6] : memref<4x36xf32, #tpu.memory_space<vmem>>, vector<4x36xf32>
    %c0_7 = arith.constant 0 : index
    %c0_8 = arith.constant 0 : index
    %5 = vector.load %arg4[%c0_7, %c0_8] : memref<4x1xf32, #tpu.memory_space<vmem>>, vector<4x1xf32>
    %6 = vector.extract_strided_slice %3 {offsets = [0, 255], sizes = [4, 1], strides = [1, 1]} : vector<4x256xf32> to vector<4x1xf32>
    %7 = vector.extract_strided_slice %3 {offsets = [0, 0], sizes = [4, 255], strides = [1, 1]} : vector<4x256xf32> to vector<4x255xf32>
    %8 = tpu.concatenate %6, %7 in 1 : vector<4x1xf32>, vector<4x255xf32> -> vector<4x256xf32>
    %c0_i32 = arith.constant 0 : i32
    %9 = vector.broadcast %c0_i32 : i32 to vector<1x256xi32>
    %10 = arith.cmpi eq, %1, %9 : vector<1x256xi32>
    %11 = vector.extract_strided_slice %3 {offsets = [0, 1], sizes = [4, 255], strides = [1, 1]} : vector<4x256xf32> to vector<4x255xf32>
    %12 = vector.extract_strided_slice %3 {offsets = [0, 0], sizes = [4, 1], strides = [1, 1]} : vector<4x256xf32> to vector<4x1xf32>
    %13 = tpu.concatenate %11, %12 in 1 : vector<4x255xf32>, vector<4x1xf32> -> vector<4x256xf32>
    %14 = vector.shape_cast %10 : vector<1x256xi1> to vector<1x256xi1>
    %15 = vector.broadcast %14 : vector<1x256xi1> to vector<4x256xi1>
    %16 = arith.select %15, %13, %8 : vector<4x256xi1>, vector<4x256xf32>
    %17 = vector.extract_strided_slice %3 {offsets = [0, 1], sizes = [4, 255], strides = [1, 1]} : vector<4x256xf32> to vector<4x255xf32>
    %18 = vector.extract_strided_slice %3 {offsets = [0, 0], sizes = [4, 1], strides = [1, 1]} : vector<4x256xf32> to vector<4x1xf32>
    %19 = tpu.concatenate %17, %18 in 1 : vector<4x255xf32>, vector<4x1xf32> -> vector<4x256xf32>
    %c15_i32 = arith.constant 15 : i32
    %20 = vector.broadcast %c15_i32 : i32 to vector<1x256xi32>
    %21 = arith.cmpi eq, %1, %20 : vector<1x256xi32>
    %22 = vector.extract_strided_slice %3 {offsets = [0, 255], sizes = [4, 1], strides = [1, 1]} : vector<4x256xf32> to vector<4x1xf32>
    %23 = vector.extract_strided_slice %3 {offsets = [0, 0], sizes = [4, 255], strides = [1, 1]} : vector<4x256xf32> to vector<4x255xf32>
    %24 = tpu.concatenate %22, %23 in 1 : vector<4x1xf32>, vector<4x255xf32> -> vector<4x256xf32>
    %25 = vector.shape_cast %21 : vector<1x256xi1> to vector<1x256xi1>
    %26 = vector.broadcast %25 : vector<1x256xi1> to vector<4x256xi1>
    %27 = arith.select %26, %24, %19 : vector<4x256xi1>, vector<4x256xf32>
    %cst = arith.constant 0.000000e+00 : f32
    %28 = vector.broadcast %cst : f32 to vector<4x256xf32>
    %29 = vector.broadcast %5 : vector<4x1xf32> to vector<4x256xf32>
    %30 = arith.addf %28, %29 : vector<4x256xf32>
    %31 = vector.extract_strided_slice %16 {offsets = [0, 240], sizes = [4, 16], strides = [1, 1]} : vector<4x256xf32> to vector<4x16xf32>
    %32 = vector.extract_strided_slice %16 {offsets = [0, 0], sizes = [4, 240], strides = [1, 1]} : vector<4x256xf32> to vector<4x240xf32>
    %33 = tpu.concatenate %31, %32 in 1 : vector<4x16xf32>, vector<4x240xf32> -> vector<4x256xf32>
    %c0_i32_9 = arith.constant 0 : i32
    %34 = vector.broadcast %c0_i32_9 : i32 to vector<1x256xi32>
    %35 = arith.cmpi eq, %0, %34 : vector<1x256xi32>
    %36 = vector.extract_strided_slice %16 {offsets = [0, 16], sizes = [4, 240], strides = [1, 1]} : vector<4x256xf32> to vector<4x240xf32>
    %37 = vector.extract_strided_slice %16 {offsets = [0, 0], sizes = [4, 16], strides = [1, 1]} : vector<4x256xf32> to vector<4x16xf32>
    %38 = tpu.concatenate %36, %37 in 1 : vector<4x240xf32>, vector<4x16xf32> -> vector<4x256xf32>
    %39 = vector.shape_cast %35 : vector<1x256xi1> to vector<1x256xi1>
    %40 = vector.broadcast %39 : vector<1x256xi1> to vector<4x256xi1>
    %41 = arith.select %40, %38, %33 : vector<4x256xi1>, vector<4x256xf32>
    %42 = vector.extract_strided_slice %4 {offsets = [0, 0], sizes = [4, 1], strides = [1, 1]} : vector<4x36xf32> to vector<4x1xf32>
    %43 = vector.extract_strided_slice %41 {offsets = [0, 0], sizes = [1, 256], strides = [1, 1]} : vector<4x256xf32> to vector<1x256xf32>
    %44 = vector.broadcast %42 : vector<4x1xf32> to vector<4x256xf32>
    %45 = vector.broadcast %43 : vector<1x256xf32> to vector<4x256xf32>
    %46 = arith.mulf %44, %45 : vector<4x256xf32>
    %47 = arith.addf %30, %46 : vector<4x256xf32>
    %48 = vector.extract_strided_slice %4 {offsets = [0, 1], sizes = [4, 1], strides = [1, 1]} : vector<4x36xf32> to vector<4x1xf32>
    %49 = vector.extract_strided_slice %41 {offsets = [1, 0], sizes = [1, 256], strides = [1, 1]} : vector<4x256xf32> to vector<1x256xf32>
    %50 = vector.broadcast %48 : vector<4x1xf32> to vector<4x256xf32>
    %51 = vector.broadcast %49 : vector<1x256xf32> to vector<4x256xf32>
    %52 = arith.mulf %50, %51 : vector<4x256xf32>
    %53 = arith.addf %47, %52 : vector<4x256xf32>
    %54 = vector.extract_strided_slice %4 {offsets = [0, 2], sizes = [4, 1], strides = [1, 1]} : vector<4x36xf32> to vector<4x1xf32>
    %55 = vector.extract_strided_slice %41 {offsets = [2, 0], sizes = [1, 256], strides = [1, 1]} : vector<4x256xf32> to vector<1x256xf32>
    %56 = vector.broadcast %54 : vector<4x1xf32> to vector<4x256xf32>
    %57 = vector.broadcast %55 : vector<1x256xf32> to vector<4x256xf32>
    %58 = arith.mulf %56, %57 : vector<4x256xf32>
    %59 = arith.addf %53, %58 : vector<4x256xf32>
    %60 = vector.extract_strided_slice %4 {offsets = [0, 3], sizes = [4, 1], strides = [1, 1]} : vector<4x36xf32> to vector<4x1xf32>
    %61 = vector.extract_strided_slice %41 {offsets = [3, 0], sizes = [1, 256], strides = [1, 1]} : vector<4x256xf32> to vector<1x256xf32>
    %62 = vector.broadcast %60 : vector<4x1xf32> to vector<4x256xf32>
    %63 = vector.broadcast %61 : vector<1x256xf32> to vector<4x256xf32>
    %64 = arith.mulf %62, %63 : vector<4x256xf32>
    %65 = arith.addf %59, %64 : vector<4x256xf32>
    %66 = vector.extract_strided_slice %3 {offsets = [0, 240], sizes = [4, 16], strides = [1, 1]} : vector<4x256xf32> to vector<4x16xf32>
    %67 = vector.extract_strided_slice %3 {offsets = [0, 0], sizes = [4, 240], strides = [1, 1]} : vector<4x256xf32> to vector<4x240xf32>
    %68 = tpu.concatenate %66, %67 in 1 : vector<4x16xf32>, vector<4x240xf32> -> vector<4x256xf32>
    %c0_i32_10 = arith.constant 0 : i32
    %69 = vector.broadcast %c0_i32_10 : i32 to vector<1x256xi32>
    %70 = arith.cmpi eq, %0, %69 : vector<1x256xi32>
    %71 = vector.extract_strided_slice %3 {offsets = [0, 16], sizes = [4, 240], strides = [1, 1]} : vector<4x256xf32> to vector<4x240xf32>
    %72 = vector.extract_strided_slice %3 {offsets = [0, 0], sizes = [4, 16], strides = [1, 1]} : vector<4x256xf32> to vector<4x16xf32>
    %73 = tpu.concatenate %71, %72 in 1 : vector<4x240xf32>, vector<4x16xf32> -> vector<4x256xf32>
    %74 = vector.shape_cast %70 : vector<1x256xi1> to vector<1x256xi1>
    %75 = vector.broadcast %74 : vector<1x256xi1> to vector<4x256xi1>
    %76 = arith.select %75, %73, %68 : vector<4x256xi1>, vector<4x256xf32>
    %77 = vector.extract_strided_slice %4 {offsets = [0, 4], sizes = [4, 1], strides = [1, 1]} : vector<4x36xf32> to vector<4x1xf32>
    %78 = vector.extract_strided_slice %76 {offsets = [0, 0], sizes = [1, 256], strides = [1, 1]} : vector<4x256xf32> to vector<1x256xf32>
    %79 = vector.broadcast %77 : vector<4x1xf32> to vector<4x256xf32>
    %80 = vector.broadcast %78 : vector<1x256xf32> to vector<4x256xf32>
    %81 = arith.mulf %79, %80 : vector<4x256xf32>
    %82 = arith.addf %65, %81 : vector<4x256xf32>
    %83 = vector.extract_strided_slice %4 {offsets = [0, 5], sizes = [4, 1], strides = [1, 1]} : vector<4x36xf32> to vector<4x1xf32>
    %84 = vector.extract_strided_slice %76 {offsets = [1, 0], sizes = [1, 256], strides = [1, 1]} : vector<4x256xf32> to vector<1x256xf32>
    %85 = vector.broadcast %83 : vector<4x1xf32> to vector<4x256xf32>
    %86 = vector.broadcast %84 : vector<1x256xf32> to vector<4x256xf32>
    %87 = arith.mulf %85, %86 : vector<4x256xf32>
    %88 = arith.addf %82, %87 : vector<4x256xf32>
    %89 = vector.extract_strided_slice %4 {offsets = [0, 6], sizes = [4, 1], strides = [1, 1]} : vector<4x36xf32> to vector<4x1xf32>
    %90 = vector.extract_strided_slice %76 {offsets = [2, 0], sizes = [1, 256], strides = [1, 1]} : vector<4x256xf32> to vector<1x256xf32>
    %91 = vector.broadcast %89 : vector<4x1xf32> to vector<4x256xf32>
    %92 = vector.broadcast %90 : vector<1x256xf32> to vector<4x256xf32>
    %93 = arith.mulf %91, %92 : vector<4x256xf32>
    %94 = arith.addf %88, %93 : vector<4x256xf32>
    %95 = vector.extract_strided_slice %4 {offsets = [0, 7], sizes = [4, 1], strides = [1, 1]} : vector<4x36xf32> to vector<4x1xf32>
    %96 = vector.extract_strided_slice %76 {offsets = [3, 0], sizes = [1, 256], strides = [1, 1]} : vector<4x256xf32> to vector<1x256xf32>
    %97 = vector.broadcast %95 : vector<4x1xf32> to vector<4x256xf32>
    %98 = vector.broadcast %96 : vector<1x256xf32> to vector<4x256xf32>
    %99 = arith.mulf %97, %98 : vector<4x256xf32>
    %100 = arith.addf %94, %99 : vector<4x256xf32>
    %101 = vector.extract_strided_slice %27 {offsets = [0, 240], sizes = [4, 16], strides = [1, 1]} : vector<4x256xf32> to vector<4x16xf32>
    %102 = vector.extract_strided_slice %27 {offsets = [0, 0], sizes = [4, 240], strides = [1, 1]} : vector<4x256xf32> to vector<4x240xf32>
    %103 = tpu.concatenate %101, %102 in 1 : vector<4x16xf32>, vector<4x240xf32> -> vector<4x256xf32>
    %c0_i32_11 = arith.constant 0 : i32
    %104 = vector.broadcast %c0_i32_11 : i32 to vector<1x256xi32>
    %105 = arith.cmpi eq, %0, %104 : vector<1x256xi32>
    %106 = vector.extract_strided_slice %27 {offsets = [0, 16], sizes = [4, 240], strides = [1, 1]} : vector<4x256xf32> to vector<4x240xf32>
    %107 = vector.extract_strided_slice %27 {offsets = [0, 0], sizes = [4, 16], strides = [1, 1]} : vector<4x256xf32> to vector<4x16xf32>
    %108 = tpu.concatenate %106, %107 in 1 : vector<4x240xf32>, vector<4x16xf32> -> vector<4x256xf32>
    %109 = vector.shape_cast %105 : vector<1x256xi1> to vector<1x256xi1>
    %110 = vector.broadcast %109 : vector<1x256xi1> to vector<4x256xi1>
    %111 = arith.select %110, %108, %103 : vector<4x256xi1>, vector<4x256xf32>
    %112 = vector.extract_strided_slice %4 {offsets = [0, 8], sizes = [4, 1], strides = [1, 1]} : vector<4x36xf32> to vector<4x1xf32>
    %113 = vector.extract_strided_slice %111 {offsets = [0, 0], sizes = [1, 256], strides = [1, 1]} : vector<4x256xf32> to vector<1x256xf32>
    %114 = vector.broadcast %112 : vector<4x1xf32> to vector<4x256xf32>
    %115 = vector.broadcast %113 : vector<1x256xf32> to vector<4x256xf32>
    %116 = arith.mulf %114, %115 : vector<4x256xf32>
    %117 = arith.addf %100, %116 : vector<4x256xf32>
    %118 = vector.extract_strided_slice %4 {offsets = [0, 9], sizes = [4, 1], strides = [1, 1]} : vector<4x36xf32> to vector<4x1xf32>
    %119 = vector.extract_strided_slice %111 {offsets = [1, 0], sizes = [1, 256], strides = [1, 1]} : vector<4x256xf32> to vector<1x256xf32>
    %120 = vector.broadcast %118 : vector<4x1xf32> to vector<4x256xf32>
    %121 = vector.broadcast %119 : vector<1x256xf32> to vector<4x256xf32>
    %122 = arith.mulf %120, %121 : vector<4x256xf32>
    %123 = arith.addf %117, %122 : vector<4x256xf32>
    %124 = vector.extract_strided_slice %4 {offsets = [0, 10], sizes = [4, 1], strides = [1, 1]} : vector<4x36xf32> to vector<4x1xf32>
    %125 = vector.extract_strided_slice %111 {offsets = [2, 0], sizes = [1, 256], strides = [1, 1]} : vector<4x256xf32> to vector<1x256xf32>
    %126 = vector.broadcast %124 : vector<4x1xf32> to vector<4x256xf32>
    %127 = vector.broadcast %125 : vector<1x256xf32> to vector<4x256xf32>
    %128 = arith.mulf %126, %127 : vector<4x256xf32>
    %129 = arith.addf %123, %128 : vector<4x256xf32>
    %130 = vector.extract_strided_slice %4 {offsets = [0, 11], sizes = [4, 1], strides = [1, 1]} : vector<4x36xf32> to vector<4x1xf32>
    %131 = vector.extract_strided_slice %111 {offsets = [3, 0], sizes = [1, 256], strides = [1, 1]} : vector<4x256xf32> to vector<1x256xf32>
    %132 = vector.broadcast %130 : vector<4x1xf32> to vector<4x256xf32>
    %133 = vector.broadcast %131 : vector<1x256xf32> to vector<4x256xf32>
    %134 = arith.mulf %132, %133 : vector<4x256xf32>
    %135 = arith.addf %129, %134 : vector<4x256xf32>
    %136 = vector.extract_strided_slice %4 {offsets = [0, 12], sizes = [4, 1], strides = [1, 1]} : vector<4x36xf32> to vector<4x1xf32>
    %137 = vector.extract_strided_slice %16 {offsets = [0, 0], sizes = [1, 256], strides = [1, 1]} : vector<4x256xf32> to vector<1x256xf32>
    %138 = vector.broadcast %136 : vector<4x1xf32> to vector<4x256xf32>
    %139 = vector.broadcast %137 : vector<1x256xf32> to vector<4x256xf32>
    %140 = arith.mulf %138, %139 : vector<4x256xf32>
    %141 = arith.addf %135, %140 : vector<4x256xf32>
    %142 = vector.extract_strided_slice %4 {offsets = [0, 13], sizes = [4, 1], strides = [1, 1]} : vector<4x36xf32> to vector<4x1xf32>
    %143 = vector.extract_strided_slice %16 {offsets = [1, 0], sizes = [1, 256], strides = [1, 1]} : vector<4x256xf32> to vector<1x256xf32>
    %144 = vector.broadcast %142 : vector<4x1xf32> to vector<4x256xf32>
    %145 = vector.broadcast %143 : vector<1x256xf32> to vector<4x256xf32>
    %146 = arith.mulf %144, %145 : vector<4x256xf32>
    %147 = arith.addf %141, %146 : vector<4x256xf32>
    %148 = vector.extract_strided_slice %4 {offsets = [0, 14], sizes = [4, 1], strides = [1, 1]} : vector<4x36xf32> to vector<4x1xf32>
    %149 = vector.extract_strided_slice %16 {offsets = [2, 0], sizes = [1, 256], strides = [1, 1]} : vector<4x256xf32> to vector<1x256xf32>
    %150 = vector.broadcast %148 : vector<4x1xf32> to vector<4x256xf32>
    %151 = vector.broadcast %149 : vector<1x256xf32> to vector<4x256xf32>
    %152 = arith.mulf %150, %151 : vector<4x256xf32>
    %153 = arith.addf %147, %152 : vector<4x256xf32>
    %154 = vector.extract_strided_slice %4 {offsets = [0, 15], sizes = [4, 1], strides = [1, 1]} : vector<4x36xf32> to vector<4x1xf32>
    %155 = vector.extract_strided_slice %16 {offsets = [3, 0], sizes = [1, 256], strides = [1, 1]} : vector<4x256xf32> to vector<1x256xf32>
    %156 = vector.broadcast %154 : vector<4x1xf32> to vector<4x256xf32>
    %157 = vector.broadcast %155 : vector<1x256xf32> to vector<4x256xf32>
    %158 = arith.mulf %156, %157 : vector<4x256xf32>
    %159 = arith.addf %153, %158 : vector<4x256xf32>
    %160 = vector.extract_strided_slice %4 {offsets = [0, 16], sizes = [4, 1], strides = [1, 1]} : vector<4x36xf32> to vector<4x1xf32>
    %161 = vector.extract_strided_slice %3 {offsets = [0, 0], sizes = [1, 256], strides = [1, 1]} : vector<4x256xf32> to vector<1x256xf32>
    %162 = vector.broadcast %160 : vector<4x1xf32> to vector<4x256xf32>
    %163 = vector.broadcast %161 : vector<1x256xf32> to vector<4x256xf32>
    %164 = arith.mulf %162, %163 : vector<4x256xf32>
    %165 = arith.addf %159, %164 : vector<4x256xf32>
    %166 = vector.extract_strided_slice %4 {offsets = [0, 17], sizes = [4, 1], strides = [1, 1]} : vector<4x36xf32> to vector<4x1xf32>
    %167 = vector.extract_strided_slice %3 {offsets = [1, 0], sizes = [1, 256], strides = [1, 1]} : vector<4x256xf32> to vector<1x256xf32>
    %168 = vector.broadcast %166 : vector<4x1xf32> to vector<4x256xf32>
    %169 = vector.broadcast %167 : vector<1x256xf32> to vector<4x256xf32>
    %170 = arith.mulf %168, %169 : vector<4x256xf32>
    %171 = arith.addf %165, %170 : vector<4x256xf32>
    %172 = vector.extract_strided_slice %4 {offsets = [0, 18], sizes = [4, 1], strides = [1, 1]} : vector<4x36xf32> to vector<4x1xf32>
    %173 = vector.extract_strided_slice %3 {offsets = [2, 0], sizes = [1, 256], strides = [1, 1]} : vector<4x256xf32> to vector<1x256xf32>
    %174 = vector.broadcast %172 : vector<4x1xf32> to vector<4x256xf32>
    %175 = vector.broadcast %173 : vector<1x256xf32> to vector<4x256xf32>
    %176 = arith.mulf %174, %175 : vector<4x256xf32>
    %177 = arith.addf %171, %176 : vector<4x256xf32>
    %178 = vector.extract_strided_slice %4 {offsets = [0, 19], sizes = [4, 1], strides = [1, 1]} : vector<4x36xf32> to vector<4x1xf32>
    %179 = vector.extract_strided_slice %3 {offsets = [3, 0], sizes = [1, 256], strides = [1, 1]} : vector<4x256xf32> to vector<1x256xf32>
    %180 = vector.broadcast %178 : vector<4x1xf32> to vector<4x256xf32>
    %181 = vector.broadcast %179 : vector<1x256xf32> to vector<4x256xf32>
    %182 = arith.mulf %180, %181 : vector<4x256xf32>
    %183 = arith.addf %177, %182 : vector<4x256xf32>
    %184 = vector.extract_strided_slice %4 {offsets = [0, 20], sizes = [4, 1], strides = [1, 1]} : vector<4x36xf32> to vector<4x1xf32>
    %185 = vector.extract_strided_slice %27 {offsets = [0, 0], sizes = [1, 256], strides = [1, 1]} : vector<4x256xf32> to vector<1x256xf32>
    %186 = vector.broadcast %184 : vector<4x1xf32> to vector<4x256xf32>
    %187 = vector.broadcast %185 : vector<1x256xf32> to vector<4x256xf32>
    %188 = arith.mulf %186, %187 : vector<4x256xf32>
    %189 = arith.addf %183, %188 : vector<4x256xf32>
    %190 = vector.extract_strided_slice %4 {offsets = [0, 21], sizes = [4, 1], strides = [1, 1]} : vector<4x36xf32> to vector<4x1xf32>
    %191 = vector.extract_strided_slice %27 {offsets = [1, 0], sizes = [1, 256], strides = [1, 1]} : vector<4x256xf32> to vector<1x256xf32>
    %192 = vector.broadcast %190 : vector<4x1xf32> to vector<4x256xf32>
    %193 = vector.broadcast %191 : vector<1x256xf32> to vector<4x256xf32>
    %194 = arith.mulf %192, %193 : vector<4x256xf32>
    %195 = arith.addf %189, %194 : vector<4x256xf32>
    %196 = vector.extract_strided_slice %4 {offsets = [0, 22], sizes = [4, 1], strides = [1, 1]} : vector<4x36xf32> to vector<4x1xf32>
    %197 = vector.extract_strided_slice %27 {offsets = [2, 0], sizes = [1, 256], strides = [1, 1]} : vector<4x256xf32> to vector<1x256xf32>
    %198 = vector.broadcast %196 : vector<4x1xf32> to vector<4x256xf32>
    %199 = vector.broadcast %197 : vector<1x256xf32> to vector<4x256xf32>
    %200 = arith.mulf %198, %199 : vector<4x256xf32>
    %201 = arith.addf %195, %200 : vector<4x256xf32>
    %202 = vector.extract_strided_slice %4 {offsets = [0, 23], sizes = [4, 1], strides = [1, 1]} : vector<4x36xf32> to vector<4x1xf32>
    %203 = vector.extract_strided_slice %27 {offsets = [3, 0], sizes = [1, 256], strides = [1, 1]} : vector<4x256xf32> to vector<1x256xf32>
    %204 = vector.broadcast %202 : vector<4x1xf32> to vector<4x256xf32>
    %205 = vector.broadcast %203 : vector<1x256xf32> to vector<4x256xf32>
    %206 = arith.mulf %204, %205 : vector<4x256xf32>
    %207 = arith.addf %201, %206 : vector<4x256xf32>
    %208 = vector.extract_strided_slice %16 {offsets = [0, 16], sizes = [4, 240], strides = [1, 1]} : vector<4x256xf32> to vector<4x240xf32>
    %209 = vector.extract_strided_slice %16 {offsets = [0, 0], sizes = [4, 16], strides = [1, 1]} : vector<4x256xf32> to vector<4x16xf32>
    %210 = tpu.concatenate %208, %209 in 1 : vector<4x240xf32>, vector<4x16xf32> -> vector<4x256xf32>
    %c15_i32_12 = arith.constant 15 : i32
    %211 = vector.broadcast %c15_i32_12 : i32 to vector<1x256xi32>
    %212 = arith.cmpi eq, %0, %211 : vector<1x256xi32>
    %213 = vector.extract_strided_slice %16 {offsets = [0, 240], sizes = [4, 16], strides = [1, 1]} : vector<4x256xf32> to vector<4x16xf32>
    %214 = vector.extract_strided_slice %16 {offsets = [0, 0], sizes = [4, 240], strides = [1, 1]} : vector<4x256xf32> to vector<4x240xf32>
    %215 = tpu.concatenate %213, %214 in 1 : vector<4x16xf32>, vector<4x240xf32> -> vector<4x256xf32>
    %216 = vector.shape_cast %212 : vector<1x256xi1> to vector<1x256xi1>
    %217 = vector.broadcast %216 : vector<1x256xi1> to vector<4x256xi1>
    %218 = arith.select %217, %215, %210 : vector<4x256xi1>, vector<4x256xf32>
    %219 = vector.extract_strided_slice %4 {offsets = [0, 24], sizes = [4, 1], strides = [1, 1]} : vector<4x36xf32> to vector<4x1xf32>
    %220 = vector.extract_strided_slice %218 {offsets = [0, 0], sizes = [1, 256], strides = [1, 1]} : vector<4x256xf32> to vector<1x256xf32>
    %221 = vector.broadcast %219 : vector<4x1xf32> to vector<4x256xf32>
    %222 = vector.broadcast %220 : vector<1x256xf32> to vector<4x256xf32>
    %223 = arith.mulf %221, %222 : vector<4x256xf32>
    %224 = arith.addf %207, %223 : vector<4x256xf32>
    %225 = vector.extract_strided_slice %4 {offsets = [0, 25], sizes = [4, 1], strides = [1, 1]} : vector<4x36xf32> to vector<4x1xf32>
    %226 = vector.extract_strided_slice %218 {offsets = [1, 0], sizes = [1, 256], strides = [1, 1]} : vector<4x256xf32> to vector<1x256xf32>
    %227 = vector.broadcast %225 : vector<4x1xf32> to vector<4x256xf32>
    %228 = vector.broadcast %226 : vector<1x256xf32> to vector<4x256xf32>
    %229 = arith.mulf %227, %228 : vector<4x256xf32>
    %230 = arith.addf %224, %229 : vector<4x256xf32>
    %231 = vector.extract_strided_slice %4 {offsets = [0, 26], sizes = [4, 1], strides = [1, 1]} : vector<4x36xf32> to vector<4x1xf32>
    %232 = vector.extract_strided_slice %218 {offsets = [2, 0], sizes = [1, 256], strides = [1, 1]} : vector<4x256xf32> to vector<1x256xf32>
    %233 = vector.broadcast %231 : vector<4x1xf32> to vector<4x256xf32>
    %234 = vector.broadcast %232 : vector<1x256xf32> to vector<4x256xf32>
    %235 = arith.mulf %233, %234 : vector<4x256xf32>
    %236 = arith.addf %230, %235 : vector<4x256xf32>
    %237 = vector.extract_strided_slice %4 {offsets = [0, 27], sizes = [4, 1], strides = [1, 1]} : vector<4x36xf32> to vector<4x1xf32>
    %238 = vector.extract_strided_slice %218 {offsets = [3, 0], sizes = [1, 256], strides = [1, 1]} : vector<4x256xf32> to vector<1x256xf32>
    %239 = vector.broadcast %237 : vector<4x1xf32> to vector<4x256xf32>
    %240 = vector.broadcast %238 : vector<1x256xf32> to vector<4x256xf32>
    %241 = arith.mulf %239, %240 : vector<4x256xf32>
    %242 = arith.addf %236, %241 : vector<4x256xf32>
    %243 = vector.extract_strided_slice %3 {offsets = [0, 16], sizes = [4, 240], strides = [1, 1]} : vector<4x256xf32> to vector<4x240xf32>
    %244 = vector.extract_strided_slice %3 {offsets = [0, 0], sizes = [4, 16], strides = [1, 1]} : vector<4x256xf32> to vector<4x16xf32>
    %245 = tpu.concatenate %243, %244 in 1 : vector<4x240xf32>, vector<4x16xf32> -> vector<4x256xf32>
    %c15_i32_13 = arith.constant 15 : i32
    %246 = vector.broadcast %c15_i32_13 : i32 to vector<1x256xi32>
    %247 = arith.cmpi eq, %0, %246 : vector<1x256xi32>
    %248 = vector.extract_strided_slice %3 {offsets = [0, 240], sizes = [4, 16], strides = [1, 1]} : vector<4x256xf32> to vector<4x16xf32>
    %249 = vector.extract_strided_slice %3 {offsets = [0, 0], sizes = [4, 240], strides = [1, 1]} : vector<4x256xf32> to vector<4x240xf32>
    %250 = tpu.concatenate %248, %249 in 1 : vector<4x16xf32>, vector<4x240xf32> -> vector<4x256xf32>
    %251 = vector.shape_cast %247 : vector<1x256xi1> to vector<1x256xi1>
    %252 = vector.broadcast %251 : vector<1x256xi1> to vector<4x256xi1>
    %253 = arith.select %252, %250, %245 : vector<4x256xi1>, vector<4x256xf32>
    %254 = vector.extract_strided_slice %4 {offsets = [0, 28], sizes = [4, 1], strides = [1, 1]} : vector<4x36xf32> to vector<4x1xf32>
    %255 = vector.extract_strided_slice %253 {offsets = [0, 0], sizes = [1, 256], strides = [1, 1]} : vector<4x256xf32> to vector<1x256xf32>
    %256 = vector.broadcast %254 : vector<4x1xf32> to vector<4x256xf32>
    %257 = vector.broadcast %255 : vector<1x256xf32> to vector<4x256xf32>
    %258 = arith.mulf %256, %257 : vector<4x256xf32>
    %259 = arith.addf %242, %258 : vector<4x256xf32>
    %260 = vector.extract_strided_slice %4 {offsets = [0, 29], sizes = [4, 1], strides = [1, 1]} : vector<4x36xf32> to vector<4x1xf32>
    %261 = vector.extract_strided_slice %253 {offsets = [1, 0], sizes = [1, 256], strides = [1, 1]} : vector<4x256xf32> to vector<1x256xf32>
    %262 = vector.broadcast %260 : vector<4x1xf32> to vector<4x256xf32>
    %263 = vector.broadcast %261 : vector<1x256xf32> to vector<4x256xf32>
    %264 = arith.mulf %262, %263 : vector<4x256xf32>
    %265 = arith.addf %259, %264 : vector<4x256xf32>
    %266 = vector.extract_strided_slice %4 {offsets = [0, 30], sizes = [4, 1], strides = [1, 1]} : vector<4x36xf32> to vector<4x1xf32>
    %267 = vector.extract_strided_slice %253 {offsets = [2, 0], sizes = [1, 256], strides = [1, 1]} : vector<4x256xf32> to vector<1x256xf32>
    %268 = vector.broadcast %266 : vector<4x1xf32> to vector<4x256xf32>
    %269 = vector.broadcast %267 : vector<1x256xf32> to vector<4x256xf32>
    %270 = arith.mulf %268, %269 : vector<4x256xf32>
    %271 = arith.addf %265, %270 : vector<4x256xf32>
    %272 = vector.extract_strided_slice %4 {offsets = [0, 31], sizes = [4, 1], strides = [1, 1]} : vector<4x36xf32> to vector<4x1xf32>
    %273 = vector.extract_strided_slice %253 {offsets = [3, 0], sizes = [1, 256], strides = [1, 1]} : vector<4x256xf32> to vector<1x256xf32>
    %274 = vector.broadcast %272 : vector<4x1xf32> to vector<4x256xf32>
    %275 = vector.broadcast %273 : vector<1x256xf32> to vector<4x256xf32>
    %276 = arith.mulf %274, %275 : vector<4x256xf32>
    %277 = arith.addf %271, %276 : vector<4x256xf32>
    %278 = vector.extract_strided_slice %27 {offsets = [0, 16], sizes = [4, 240], strides = [1, 1]} : vector<4x256xf32> to vector<4x240xf32>
    %279 = vector.extract_strided_slice %27 {offsets = [0, 0], sizes = [4, 16], strides = [1, 1]} : vector<4x256xf32> to vector<4x16xf32>
    %280 = tpu.concatenate %278, %279 in 1 : vector<4x240xf32>, vector<4x16xf32> -> vector<4x256xf32>
    %c15_i32_14 = arith.constant 15 : i32
    %281 = vector.broadcast %c15_i32_14 : i32 to vector<1x256xi32>
    %282 = arith.cmpi eq, %0, %281 : vector<1x256xi32>
    %283 = vector.extract_strided_slice %27 {offsets = [0, 240], sizes = [4, 16], strides = [1, 1]} : vector<4x256xf32> to vector<4x16xf32>
    %284 = vector.extract_strided_slice %27 {offsets = [0, 0], sizes = [4, 240], strides = [1, 1]} : vector<4x256xf32> to vector<4x240xf32>
    %285 = tpu.concatenate %283, %284 in 1 : vector<4x16xf32>, vector<4x240xf32> -> vector<4x256xf32>
    %286 = vector.shape_cast %282 : vector<1x256xi1> to vector<1x256xi1>
    %287 = vector.broadcast %286 : vector<1x256xi1> to vector<4x256xi1>
    %288 = arith.select %287, %285, %280 : vector<4x256xi1>, vector<4x256xf32>
    %289 = vector.extract_strided_slice %4 {offsets = [0, 32], sizes = [4, 1], strides = [1, 1]} : vector<4x36xf32> to vector<4x1xf32>
    %290 = vector.extract_strided_slice %288 {offsets = [0, 0], sizes = [1, 256], strides = [1, 1]} : vector<4x256xf32> to vector<1x256xf32>
    %291 = vector.broadcast %289 : vector<4x1xf32> to vector<4x256xf32>
    %292 = vector.broadcast %290 : vector<1x256xf32> to vector<4x256xf32>
    %293 = arith.mulf %291, %292 : vector<4x256xf32>
    %294 = arith.addf %277, %293 : vector<4x256xf32>
    %295 = vector.extract_strided_slice %4 {offsets = [0, 33], sizes = [4, 1], strides = [1, 1]} : vector<4x36xf32> to vector<4x1xf32>
    %296 = vector.extract_strided_slice %288 {offsets = [1, 0], sizes = [1, 256], strides = [1, 1]} : vector<4x256xf32> to vector<1x256xf32>
    %297 = vector.broadcast %295 : vector<4x1xf32> to vector<4x256xf32>
    %298 = vector.broadcast %296 : vector<1x256xf32> to vector<4x256xf32>
    %299 = arith.mulf %297, %298 : vector<4x256xf32>
    %300 = arith.addf %294, %299 : vector<4x256xf32>
    %301 = vector.extract_strided_slice %4 {offsets = [0, 34], sizes = [4, 1], strides = [1, 1]} : vector<4x36xf32> to vector<4x1xf32>
    %302 = vector.extract_strided_slice %288 {offsets = [2, 0], sizes = [1, 256], strides = [1, 1]} : vector<4x256xf32> to vector<1x256xf32>
    %303 = vector.broadcast %301 : vector<4x1xf32> to vector<4x256xf32>
    %304 = vector.broadcast %302 : vector<1x256xf32> to vector<4x256xf32>
    %305 = arith.mulf %303, %304 : vector<4x256xf32>
    %306 = arith.addf %300, %305 : vector<4x256xf32>
    %307 = vector.extract_strided_slice %4 {offsets = [0, 35], sizes = [4, 1], strides = [1, 1]} : vector<4x36xf32> to vector<4x1xf32>
    %308 = vector.extract_strided_slice %288 {offsets = [3, 0], sizes = [1, 256], strides = [1, 1]} : vector<4x256xf32> to vector<1x256xf32>
    %309 = vector.broadcast %307 : vector<4x1xf32> to vector<4x256xf32>
    %310 = vector.broadcast %308 : vector<1x256xf32> to vector<4x256xf32>
    %311 = arith.mulf %309, %310 : vector<4x256xf32>
    %312 = arith.addf %306, %311 : vector<4x256xf32>
    %cst_15 = arith.constant 0.000000e+00 : f32
    %313 = vector.broadcast %cst_15 : f32 to vector<4x256xf32>
    %314 = arith.cmpf ogt, %312, %313 : vector<4x256xf32>
    %cst_16 = arith.constant 0.000000e+00 : f32
    %315 = vector.broadcast %cst_16 : f32 to vector<4x256xf32>
    %316 = arith.minimumf %312, %315 : vector<4x256xf32>
    %317 = math.exp %316 : vector<4x256xf32>
    %cst_17 = arith.constant 1.000000e+00 : f32
    %318 = vector.broadcast %cst_17 : f32 to vector<4x256xf32>
    %319 = arith.subf %317, %318 : vector<4x256xf32>
    %cst_18 = arith.constant 1.67326319 : f32
    %320 = vector.broadcast %cst_18 : f32 to vector<4x256xf32>
    %321 = arith.mulf %320, %319 : vector<4x256xf32>
    %322 = arith.select %314, %312, %321 : vector<4x256xi1>, vector<4x256xf32>
    %cst_19 = arith.constant 1.05070102 : f32
    %323 = vector.broadcast %cst_19 : f32 to vector<4x256xf32>
    %324 = arith.mulf %323, %322 : vector<4x256xf32>
    %c0_20 = arith.constant 0 : index
    %c0_21 = arith.constant 0 : index
    %325 = vector.load %arg5[%c0_20, %c0_21] : memref<4x36xf32, #tpu.memory_space<vmem>>, vector<4x36xf32>
    %c0_22 = arith.constant 0 : index
    %c0_23 = arith.constant 0 : index
    %326 = vector.load %arg6[%c0_22, %c0_23] : memref<4x1xf32, #tpu.memory_space<vmem>>, vector<4x1xf32>
    %327 = vector.extract_strided_slice %324 {offsets = [0, 255], sizes = [4, 1], strides = [1, 1]} : vector<4x256xf32> to vector<4x1xf32>
    %328 = vector.extract_strided_slice %324 {offsets = [0, 0], sizes = [4, 255], strides = [1, 1]} : vector<4x256xf32> to vector<4x255xf32>
    %329 = tpu.concatenate %327, %328 in 1 : vector<4x1xf32>, vector<4x255xf32> -> vector<4x256xf32>
    %c0_i32_24 = arith.constant 0 : i32
    %330 = vector.broadcast %c0_i32_24 : i32 to vector<1x256xi32>
    %331 = arith.cmpi eq, %1, %330 : vector<1x256xi32>
    %332 = vector.extract_strided_slice %324 {offsets = [0, 1], sizes = [4, 255], strides = [1, 1]} : vector<4x256xf32> to vector<4x255xf32>
    %333 = vector.extract_strided_slice %324 {offsets = [0, 0], sizes = [4, 1], strides = [1, 1]} : vector<4x256xf32> to vector<4x1xf32>
    %334 = tpu.concatenate %332, %333 in 1 : vector<4x255xf32>, vector<4x1xf32> -> vector<4x256xf32>
    %335 = vector.shape_cast %331 : vector<1x256xi1> to vector<1x256xi1>
    %336 = vector.broadcast %335 : vector<1x256xi1> to vector<4x256xi1>
    %337 = arith.select %336, %334, %329 : vector<4x256xi1>, vector<4x256xf32>
    %338 = vector.extract_strided_slice %324 {offsets = [0, 1], sizes = [4, 255], strides = [1, 1]} : vector<4x256xf32> to vector<4x255xf32>
    %339 = vector.extract_strided_slice %324 {offsets = [0, 0], sizes = [4, 1], strides = [1, 1]} : vector<4x256xf32> to vector<4x1xf32>
    %340 = tpu.concatenate %338, %339 in 1 : vector<4x255xf32>, vector<4x1xf32> -> vector<4x256xf32>
    %c15_i32_25 = arith.constant 15 : i32
    %341 = vector.broadcast %c15_i32_25 : i32 to vector<1x256xi32>
    %342 = arith.cmpi eq, %1, %341 : vector<1x256xi32>
    %343 = vector.extract_strided_slice %324 {offsets = [0, 255], sizes = [4, 1], strides = [1, 1]} : vector<4x256xf32> to vector<4x1xf32>
    %344 = vector.extract_strided_slice %324 {offsets = [0, 0], sizes = [4, 255], strides = [1, 1]} : vector<4x256xf32> to vector<4x255xf32>
    %345 = tpu.concatenate %343, %344 in 1 : vector<4x1xf32>, vector<4x255xf32> -> vector<4x256xf32>
    %346 = vector.shape_cast %342 : vector<1x256xi1> to vector<1x256xi1>
    %347 = vector.broadcast %346 : vector<1x256xi1> to vector<4x256xi1>
    %348 = arith.select %347, %345, %340 : vector<4x256xi1>, vector<4x256xf32>
    %cst_26 = arith.constant 0.000000e+00 : f32
    %349 = vector.broadcast %cst_26 : f32 to vector<4x256xf32>
    %350 = vector.broadcast %326 : vector<4x1xf32> to vector<4x256xf32>
    %351 = arith.addf %349, %350 : vector<4x256xf32>
    %352 = vector.extract_strided_slice %337 {offsets = [0, 240], sizes = [4, 16], strides = [1, 1]} : vector<4x256xf32> to vector<4x16xf32>
    %353 = vector.extract_strided_slice %337 {offsets = [0, 0], sizes = [4, 240], strides = [1, 1]} : vector<4x256xf32> to vector<4x240xf32>
    %354 = tpu.concatenate %352, %353 in 1 : vector<4x16xf32>, vector<4x240xf32> -> vector<4x256xf32>
    %c0_i32_27 = arith.constant 0 : i32
    %355 = vector.broadcast %c0_i32_27 : i32 to vector<1x256xi32>
    %356 = arith.cmpi eq, %0, %355 : vector<1x256xi32>
    %357 = vector.extract_strided_slice %337 {offsets = [0, 16], sizes = [4, 240], strides = [1, 1]} : vector<4x256xf32> to vector<4x240xf32>
    %358 = vector.extract_strided_slice %337 {offsets = [0, 0], sizes = [4, 16], strides = [1, 1]} : vector<4x256xf32> to vector<4x16xf32>
    %359 = tpu.concatenate %357, %358 in 1 : vector<4x240xf32>, vector<4x16xf32> -> vector<4x256xf32>
    %360 = vector.shape_cast %356 : vector<1x256xi1> to vector<1x256xi1>
    %361 = vector.broadcast %360 : vector<1x256xi1> to vector<4x256xi1>
    %362 = arith.select %361, %359, %354 : vector<4x256xi1>, vector<4x256xf32>
    %363 = vector.extract_strided_slice %325 {offsets = [0, 0], sizes = [4, 1], strides = [1, 1]} : vector<4x36xf32> to vector<4x1xf32>
    %364 = vector.extract_strided_slice %362 {offsets = [0, 0], sizes = [1, 256], strides = [1, 1]} : vector<4x256xf32> to vector<1x256xf32>
    %365 = vector.broadcast %363 : vector<4x1xf32> to vector<4x256xf32>
    %366 = vector.broadcast %364 : vector<1x256xf32> to vector<4x256xf32>
    %367 = arith.mulf %365, %366 : vector<4x256xf32>
    %368 = arith.addf %351, %367 : vector<4x256xf32>
    %369 = vector.extract_strided_slice %325 {offsets = [0, 1], sizes = [4, 1], strides = [1, 1]} : vector<4x36xf32> to vector<4x1xf32>
    %370 = vector.extract_strided_slice %362 {offsets = [1, 0], sizes = [1, 256], strides = [1, 1]} : vector<4x256xf32> to vector<1x256xf32>
    %371 = vector.broadcast %369 : vector<4x1xf32> to vector<4x256xf32>
    %372 = vector.broadcast %370 : vector<1x256xf32> to vector<4x256xf32>
    %373 = arith.mulf %371, %372 : vector<4x256xf32>
    %374 = arith.addf %368, %373 : vector<4x256xf32>
    %375 = vector.extract_strided_slice %325 {offsets = [0, 2], sizes = [4, 1], strides = [1, 1]} : vector<4x36xf32> to vector<4x1xf32>
    %376 = vector.extract_strided_slice %362 {offsets = [2, 0], sizes = [1, 256], strides = [1, 1]} : vector<4x256xf32> to vector<1x256xf32>
    %377 = vector.broadcast %375 : vector<4x1xf32> to vector<4x256xf32>
    %378 = vector.broadcast %376 : vector<1x256xf32> to vector<4x256xf32>
    %379 = arith.mulf %377, %378 : vector<4x256xf32>
    %380 = arith.addf %374, %379 : vector<4x256xf32>
    %381 = vector.extract_strided_slice %325 {offsets = [0, 3], sizes = [4, 1], strides = [1, 1]} : vector<4x36xf32> to vector<4x1xf32>
    %382 = vector.extract_strided_slice %362 {offsets = [3, 0], sizes = [1, 256], strides = [1, 1]} : vector<4x256xf32> to vector<1x256xf32>
    %383 = vector.broadcast %381 : vector<4x1xf32> to vector<4x256xf32>
    %384 = vector.broadcast %382 : vector<1x256xf32> to vector<4x256xf32>
    %385 = arith.mulf %383, %384 : vector<4x256xf32>
    %386 = arith.addf %380, %385 : vector<4x256xf32>
    %387 = vector.extract_strided_slice %324 {offsets = [0, 240], sizes = [4, 16], strides = [1, 1]} : vector<4x256xf32> to vector<4x16xf32>
    %388 = vector.extract_strided_slice %324 {offsets = [0, 0], sizes = [4, 240], strides = [1, 1]} : vector<4x256xf32> to vector<4x240xf32>
    %389 = tpu.concatenate %387, %388 in 1 : vector<4x16xf32>, vector<4x240xf32> -> vector<4x256xf32>
    %c0_i32_28 = arith.constant 0 : i32
    %390 = vector.broadcast %c0_i32_28 : i32 to vector<1x256xi32>
    %391 = arith.cmpi eq, %0, %390 : vector<1x256xi32>
    %392 = vector.extract_strided_slice %324 {offsets = [0, 16], sizes = [4, 240], strides = [1, 1]} : vector<4x256xf32> to vector<4x240xf32>
    %393 = vector.extract_strided_slice %324 {offsets = [0, 0], sizes = [4, 16], strides = [1, 1]} : vector<4x256xf32> to vector<4x16xf32>
    %394 = tpu.concatenate %392, %393 in 1 : vector<4x240xf32>, vector<4x16xf32> -> vector<4x256xf32>
    %395 = vector.shape_cast %391 : vector<1x256xi1> to vector<1x256xi1>
    %396 = vector.broadcast %395 : vector<1x256xi1> to vector<4x256xi1>
    %397 = arith.select %396, %394, %389 : vector<4x256xi1>, vector<4x256xf32>
    %398 = vector.extract_strided_slice %325 {offsets = [0, 4], sizes = [4, 1], strides = [1, 1]} : vector<4x36xf32> to vector<4x1xf32>
    %399 = vector.extract_strided_slice %397 {offsets = [0, 0], sizes = [1, 256], strides = [1, 1]} : vector<4x256xf32> to vector<1x256xf32>
    %400 = vector.broadcast %398 : vector<4x1xf32> to vector<4x256xf32>
    %401 = vector.broadcast %399 : vector<1x256xf32> to vector<4x256xf32>
    %402 = arith.mulf %400, %401 : vector<4x256xf32>
    %403 = arith.addf %386, %402 : vector<4x256xf32>
    %404 = vector.extract_strided_slice %325 {offsets = [0, 5], sizes = [4, 1], strides = [1, 1]} : vector<4x36xf32> to vector<4x1xf32>
    %405 = vector.extract_strided_slice %397 {offsets = [1, 0], sizes = [1, 256], strides = [1, 1]} : vector<4x256xf32> to vector<1x256xf32>
    %406 = vector.broadcast %404 : vector<4x1xf32> to vector<4x256xf32>
    %407 = vector.broadcast %405 : vector<1x256xf32> to vector<4x256xf32>
    %408 = arith.mulf %406, %407 : vector<4x256xf32>
    %409 = arith.addf %403, %408 : vector<4x256xf32>
    %410 = vector.extract_strided_slice %325 {offsets = [0, 6], sizes = [4, 1], strides = [1, 1]} : vector<4x36xf32> to vector<4x1xf32>
    %411 = vector.extract_strided_slice %397 {offsets = [2, 0], sizes = [1, 256], strides = [1, 1]} : vector<4x256xf32> to vector<1x256xf32>
    %412 = vector.broadcast %410 : vector<4x1xf32> to vector<4x256xf32>
    %413 = vector.broadcast %411 : vector<1x256xf32> to vector<4x256xf32>
    %414 = arith.mulf %412, %413 : vector<4x256xf32>
    %415 = arith.addf %409, %414 : vector<4x256xf32>
    %416 = vector.extract_strided_slice %325 {offsets = [0, 7], sizes = [4, 1], strides = [1, 1]} : vector<4x36xf32> to vector<4x1xf32>
    %417 = vector.extract_strided_slice %397 {offsets = [3, 0], sizes = [1, 256], strides = [1, 1]} : vector<4x256xf32> to vector<1x256xf32>
    %418 = vector.broadcast %416 : vector<4x1xf32> to vector<4x256xf32>
    %419 = vector.broadcast %417 : vector<1x256xf32> to vector<4x256xf32>
    %420 = arith.mulf %418, %419 : vector<4x256xf32>
    %421 = arith.addf %415, %420 : vector<4x256xf32>
    %422 = vector.extract_strided_slice %348 {offsets = [0, 240], sizes = [4, 16], strides = [1, 1]} : vector<4x256xf32> to vector<4x16xf32>
    %423 = vector.extract_strided_slice %348 {offsets = [0, 0], sizes = [4, 240], strides = [1, 1]} : vector<4x256xf32> to vector<4x240xf32>
    %424 = tpu.concatenate %422, %423 in 1 : vector<4x16xf32>, vector<4x240xf32> -> vector<4x256xf32>
    %c0_i32_29 = arith.constant 0 : i32
    %425 = vector.broadcast %c0_i32_29 : i32 to vector<1x256xi32>
    %426 = arith.cmpi eq, %0, %425 : vector<1x256xi32>
    %427 = vector.extract_strided_slice %348 {offsets = [0, 16], sizes = [4, 240], strides = [1, 1]} : vector<4x256xf32> to vector<4x240xf32>
    %428 = vector.extract_strided_slice %348 {offsets = [0, 0], sizes = [4, 16], strides = [1, 1]} : vector<4x256xf32> to vector<4x16xf32>
    %429 = tpu.concatenate %427, %428 in 1 : vector<4x240xf32>, vector<4x16xf32> -> vector<4x256xf32>
    %430 = vector.shape_cast %426 : vector<1x256xi1> to vector<1x256xi1>
    %431 = vector.broadcast %430 : vector<1x256xi1> to vector<4x256xi1>
    %432 = arith.select %431, %429, %424 : vector<4x256xi1>, vector<4x256xf32>
    %433 = vector.extract_strided_slice %325 {offsets = [0, 8], sizes = [4, 1], strides = [1, 1]} : vector<4x36xf32> to vector<4x1xf32>
    %434 = vector.extract_strided_slice %432 {offsets = [0, 0], sizes = [1, 256], strides = [1, 1]} : vector<4x256xf32> to vector<1x256xf32>
    %435 = vector.broadcast %433 : vector<4x1xf32> to vector<4x256xf32>
    %436 = vector.broadcast %434 : vector<1x256xf32> to vector<4x256xf32>
    %437 = arith.mulf %435, %436 : vector<4x256xf32>
    %438 = arith.addf %421, %437 : vector<4x256xf32>
    %439 = vector.extract_strided_slice %325 {offsets = [0, 9], sizes = [4, 1], strides = [1, 1]} : vector<4x36xf32> to vector<4x1xf32>
    %440 = vector.extract_strided_slice %432 {offsets = [1, 0], sizes = [1, 256], strides = [1, 1]} : vector<4x256xf32> to vector<1x256xf32>
    %441 = vector.broadcast %439 : vector<4x1xf32> to vector<4x256xf32>
    %442 = vector.broadcast %440 : vector<1x256xf32> to vector<4x256xf32>
    %443 = arith.mulf %441, %442 : vector<4x256xf32>
    %444 = arith.addf %438, %443 : vector<4x256xf32>
    %445 = vector.extract_strided_slice %325 {offsets = [0, 10], sizes = [4, 1], strides = [1, 1]} : vector<4x36xf32> to vector<4x1xf32>
    %446 = vector.extract_strided_slice %432 {offsets = [2, 0], sizes = [1, 256], strides = [1, 1]} : vector<4x256xf32> to vector<1x256xf32>
    %447 = vector.broadcast %445 : vector<4x1xf32> to vector<4x256xf32>
    %448 = vector.broadcast %446 : vector<1x256xf32> to vector<4x256xf32>
    %449 = arith.mulf %447, %448 : vector<4x256xf32>
    %450 = arith.addf %444, %449 : vector<4x256xf32>
    %451 = vector.extract_strided_slice %325 {offsets = [0, 11], sizes = [4, 1], strides = [1, 1]} : vector<4x36xf32> to vector<4x1xf32>
    %452 = vector.extract_strided_slice %432 {offsets = [3, 0], sizes = [1, 256], strides = [1, 1]} : vector<4x256xf32> to vector<1x256xf32>
    %453 = vector.broadcast %451 : vector<4x1xf32> to vector<4x256xf32>
    %454 = vector.broadcast %452 : vector<1x256xf32> to vector<4x256xf32>
    %455 = arith.mulf %453, %454 : vector<4x256xf32>
    %456 = arith.addf %450, %455 : vector<4x256xf32>
    %457 = vector.extract_strided_slice %325 {offsets = [0, 12], sizes = [4, 1], strides = [1, 1]} : vector<4x36xf32> to vector<4x1xf32>
    %458 = vector.extract_strided_slice %337 {offsets = [0, 0], sizes = [1, 256], strides = [1, 1]} : vector<4x256xf32> to vector<1x256xf32>
    %459 = vector.broadcast %457 : vector<4x1xf32> to vector<4x256xf32>
    %460 = vector.broadcast %458 : vector<1x256xf32> to vector<4x256xf32>
    %461 = arith.mulf %459, %460 : vector<4x256xf32>
    %462 = arith.addf %456, %461 : vector<4x256xf32>
    %463 = vector.extract_strided_slice %325 {offsets = [0, 13], sizes = [4, 1], strides = [1, 1]} : vector<4x36xf32> to vector<4x1xf32>
    %464 = vector.extract_strided_slice %337 {offsets = [1, 0], sizes = [1, 256], strides = [1, 1]} : vector<4x256xf32> to vector<1x256xf32>
    %465 = vector.broadcast %463 : vector<4x1xf32> to vector<4x256xf32>
    %466 = vector.broadcast %464 : vector<1x256xf32> to vector<4x256xf32>
    %467 = arith.mulf %465, %466 : vector<4x256xf32>
    %468 = arith.addf %462, %467 : vector<4x256xf32>
    %469 = vector.extract_strided_slice %325 {offsets = [0, 14], sizes = [4, 1], strides = [1, 1]} : vector<4x36xf32> to vector<4x1xf32>
    %470 = vector.extract_strided_slice %337 {offsets = [2, 0], sizes = [1, 256], strides = [1, 1]} : vector<4x256xf32> to vector<1x256xf32>
    %471 = vector.broadcast %469 : vector<4x1xf32> to vector<4x256xf32>
    %472 = vector.broadcast %470 : vector<1x256xf32> to vector<4x256xf32>
    %473 = arith.mulf %471, %472 : vector<4x256xf32>
    %474 = arith.addf %468, %473 : vector<4x256xf32>
    %475 = vector.extract_strided_slice %325 {offsets = [0, 15], sizes = [4, 1], strides = [1, 1]} : vector<4x36xf32> to vector<4x1xf32>
    %476 = vector.extract_strided_slice %337 {offsets = [3, 0], sizes = [1, 256], strides = [1, 1]} : vector<4x256xf32> to vector<1x256xf32>
    %477 = vector.broadcast %475 : vector<4x1xf32> to vector<4x256xf32>
    %478 = vector.broadcast %476 : vector<1x256xf32> to vector<4x256xf32>
    %479 = arith.mulf %477, %478 : vector<4x256xf32>
    %480 = arith.addf %474, %479 : vector<4x256xf32>
    %481 = vector.extract_strided_slice %325 {offsets = [0, 16], sizes = [4, 1], strides = [1, 1]} : vector<4x36xf32> to vector<4x1xf32>
    %482 = vector.extract_strided_slice %324 {offsets = [0, 0], sizes = [1, 256], strides = [1, 1]} : vector<4x256xf32> to vector<1x256xf32>
    %483 = vector.broadcast %481 : vector<4x1xf32> to vector<4x256xf32>
    %484 = vector.broadcast %482 : vector<1x256xf32> to vector<4x256xf32>
    %485 = arith.mulf %483, %484 : vector<4x256xf32>
    %486 = arith.addf %480, %485 : vector<4x256xf32>
    %487 = vector.extract_strided_slice %325 {offsets = [0, 17], sizes = [4, 1], strides = [1, 1]} : vector<4x36xf32> to vector<4x1xf32>
    %488 = vector.extract_strided_slice %324 {offsets = [1, 0], sizes = [1, 256], strides = [1, 1]} : vector<4x256xf32> to vector<1x256xf32>
    %489 = vector.broadcast %487 : vector<4x1xf32> to vector<4x256xf32>
    %490 = vector.broadcast %488 : vector<1x256xf32> to vector<4x256xf32>
    %491 = arith.mulf %489, %490 : vector<4x256xf32>
    %492 = arith.addf %486, %491 : vector<4x256xf32>
    %493 = vector.extract_strided_slice %325 {offsets = [0, 18], sizes = [4, 1], strides = [1, 1]} : vector<4x36xf32> to vector<4x1xf32>
    %494 = vector.extract_strided_slice %324 {offsets = [2, 0], sizes = [1, 256], strides = [1, 1]} : vector<4x256xf32> to vector<1x256xf32>
    %495 = vector.broadcast %493 : vector<4x1xf32> to vector<4x256xf32>
    %496 = vector.broadcast %494 : vector<1x256xf32> to vector<4x256xf32>
    %497 = arith.mulf %495, %496 : vector<4x256xf32>
    %498 = arith.addf %492, %497 : vector<4x256xf32>
    %499 = vector.extract_strided_slice %325 {offsets = [0, 19], sizes = [4, 1], strides = [1, 1]} : vector<4x36xf32> to vector<4x1xf32>
    %500 = vector.extract_strided_slice %324 {offsets = [3, 0], sizes = [1, 256], strides = [1, 1]} : vector<4x256xf32> to vector<1x256xf32>
    %501 = vector.broadcast %499 : vector<4x1xf32> to vector<4x256xf32>
    %502 = vector.broadcast %500 : vector<1x256xf32> to vector<4x256xf32>
    %503 = arith.mulf %501, %502 : vector<4x256xf32>
    %504 = arith.addf %498, %503 : vector<4x256xf32>
    %505 = vector.extract_strided_slice %325 {offsets = [0, 20], sizes = [4, 1], strides = [1, 1]} : vector<4x36xf32> to vector<4x1xf32>
    %506 = vector.extract_strided_slice %348 {offsets = [0, 0], sizes = [1, 256], strides = [1, 1]} : vector<4x256xf32> to vector<1x256xf32>
    %507 = vector.broadcast %505 : vector<4x1xf32> to vector<4x256xf32>
    %508 = vector.broadcast %506 : vector<1x256xf32> to vector<4x256xf32>
    %509 = arith.mulf %507, %508 : vector<4x256xf32>
    %510 = arith.addf %504, %509 : vector<4x256xf32>
    %511 = vector.extract_strided_slice %325 {offsets = [0, 21], sizes = [4, 1], strides = [1, 1]} : vector<4x36xf32> to vector<4x1xf32>
    %512 = vector.extract_strided_slice %348 {offsets = [1, 0], sizes = [1, 256], strides = [1, 1]} : vector<4x256xf32> to vector<1x256xf32>
    %513 = vector.broadcast %511 : vector<4x1xf32> to vector<4x256xf32>
    %514 = vector.broadcast %512 : vector<1x256xf32> to vector<4x256xf32>
    %515 = arith.mulf %513, %514 : vector<4x256xf32>
    %516 = arith.addf %510, %515 : vector<4x256xf32>
    %517 = vector.extract_strided_slice %325 {offsets = [0, 22], sizes = [4, 1], strides = [1, 1]} : vector<4x36xf32> to vector<4x1xf32>
    %518 = vector.extract_strided_slice %348 {offsets = [2, 0], sizes = [1, 256], strides = [1, 1]} : vector<4x256xf32> to vector<1x256xf32>
    %519 = vector.broadcast %517 : vector<4x1xf32> to vector<4x256xf32>
    %520 = vector.broadcast %518 : vector<1x256xf32> to vector<4x256xf32>
    %521 = arith.mulf %519, %520 : vector<4x256xf32>
    %522 = arith.addf %516, %521 : vector<4x256xf32>
    %523 = vector.extract_strided_slice %325 {offsets = [0, 23], sizes = [4, 1], strides = [1, 1]} : vector<4x36xf32> to vector<4x1xf32>
    %524 = vector.extract_strided_slice %348 {offsets = [3, 0], sizes = [1, 256], strides = [1, 1]} : vector<4x256xf32> to vector<1x256xf32>
    %525 = vector.broadcast %523 : vector<4x1xf32> to vector<4x256xf32>
    %526 = vector.broadcast %524 : vector<1x256xf32> to vector<4x256xf32>
    %527 = arith.mulf %525, %526 : vector<4x256xf32>
    %528 = arith.addf %522, %527 : vector<4x256xf32>
    %529 = vector.extract_strided_slice %337 {offsets = [0, 16], sizes = [4, 240], strides = [1, 1]} : vector<4x256xf32> to vector<4x240xf32>
    %530 = vector.extract_strided_slice %337 {offsets = [0, 0], sizes = [4, 16], strides = [1, 1]} : vector<4x256xf32> to vector<4x16xf32>
    %531 = tpu.concatenate %529, %530 in 1 : vector<4x240xf32>, vector<4x16xf32> -> vector<4x256xf32>
    %c15_i32_30 = arith.constant 15 : i32
    %532 = vector.broadcast %c15_i32_30 : i32 to vector<1x256xi32>
    %533 = arith.cmpi eq, %0, %532 : vector<1x256xi32>
    %534 = vector.extract_strided_slice %337 {offsets = [0, 240], sizes = [4, 16], strides = [1, 1]} : vector<4x256xf32> to vector<4x16xf32>
    %535 = vector.extract_strided_slice %337 {offsets = [0, 0], sizes = [4, 240], strides = [1, 1]} : vector<4x256xf32> to vector<4x240xf32>
    %536 = tpu.concatenate %534, %535 in 1 : vector<4x16xf32>, vector<4x240xf32> -> vector<4x256xf32>
    %537 = vector.shape_cast %533 : vector<1x256xi1> to vector<1x256xi1>
    %538 = vector.broadcast %537 : vector<1x256xi1> to vector<4x256xi1>
    %539 = arith.select %538, %536, %531 : vector<4x256xi1>, vector<4x256xf32>
    %540 = vector.extract_strided_slice %325 {offsets = [0, 24], sizes = [4, 1], strides = [1, 1]} : vector<4x36xf32> to vector<4x1xf32>
    %541 = vector.extract_strided_slice %539 {offsets = [0, 0], sizes = [1, 256], strides = [1, 1]} : vector<4x256xf32> to vector<1x256xf32>
    %542 = vector.broadcast %540 : vector<4x1xf32> to vector<4x256xf32>
    %543 = vector.broadcast %541 : vector<1x256xf32> to vector<4x256xf32>
    %544 = arith.mulf %542, %543 : vector<4x256xf32>
    %545 = arith.addf %528, %544 : vector<4x256xf32>
    %546 = vector.extract_strided_slice %325 {offsets = [0, 25], sizes = [4, 1], strides = [1, 1]} : vector<4x36xf32> to vector<4x1xf32>
    %547 = vector.extract_strided_slice %539 {offsets = [1, 0], sizes = [1, 256], strides = [1, 1]} : vector<4x256xf32> to vector<1x256xf32>
    %548 = vector.broadcast %546 : vector<4x1xf32> to vector<4x256xf32>
    %549 = vector.broadcast %547 : vector<1x256xf32> to vector<4x256xf32>
    %550 = arith.mulf %548, %549 : vector<4x256xf32>
    %551 = arith.addf %545, %550 : vector<4x256xf32>
    %552 = vector.extract_strided_slice %325 {offsets = [0, 26], sizes = [4, 1], strides = [1, 1]} : vector<4x36xf32> to vector<4x1xf32>
    %553 = vector.extract_strided_slice %539 {offsets = [2, 0], sizes = [1, 256], strides = [1, 1]} : vector<4x256xf32> to vector<1x256xf32>
    %554 = vector.broadcast %552 : vector<4x1xf32> to vector<4x256xf32>
    %555 = vector.broadcast %553 : vector<1x256xf32> to vector<4x256xf32>
    %556 = arith.mulf %554, %555 : vector<4x256xf32>
    %557 = arith.addf %551, %556 : vector<4x256xf32>
    %558 = vector.extract_strided_slice %325 {offsets = [0, 27], sizes = [4, 1], strides = [1, 1]} : vector<4x36xf32> to vector<4x1xf32>
    %559 = vector.extract_strided_slice %539 {offsets = [3, 0], sizes = [1, 256], strides = [1, 1]} : vector<4x256xf32> to vector<1x256xf32>
    %560 = vector.broadcast %558 : vector<4x1xf32> to vector<4x256xf32>
    %561 = vector.broadcast %559 : vector<1x256xf32> to vector<4x256xf32>
    %562 = arith.mulf %560, %561 : vector<4x256xf32>
    %563 = arith.addf %557, %562 : vector<4x256xf32>
    %564 = vector.extract_strided_slice %324 {offsets = [0, 16], sizes = [4, 240], strides = [1, 1]} : vector<4x256xf32> to vector<4x240xf32>
    %565 = vector.extract_strided_slice %324 {offsets = [0, 0], sizes = [4, 16], strides = [1, 1]} : vector<4x256xf32> to vector<4x16xf32>
    %566 = tpu.concatenate %564, %565 in 1 : vector<4x240xf32>, vector<4x16xf32> -> vector<4x256xf32>
    %c15_i32_31 = arith.constant 15 : i32
    %567 = vector.broadcast %c15_i32_31 : i32 to vector<1x256xi32>
    %568 = arith.cmpi eq, %0, %567 : vector<1x256xi32>
    %569 = vector.extract_strided_slice %324 {offsets = [0, 240], sizes = [4, 16], strides = [1, 1]} : vector<4x256xf32> to vector<4x16xf32>
    %570 = vector.extract_strided_slice %324 {offsets = [0, 0], sizes = [4, 240], strides = [1, 1]} : vector<4x256xf32> to vector<4x240xf32>
    %571 = tpu.concatenate %569, %570 in 1 : vector<4x16xf32>, vector<4x240xf32> -> vector<4x256xf32>
    %572 = vector.shape_cast %568 : vector<1x256xi1> to vector<1x256xi1>
    %573 = vector.broadcast %572 : vector<1x256xi1> to vector<4x256xi1>
    %574 = arith.select %573, %571, %566 : vector<4x256xi1>, vector<4x256xf32>
    %575 = vector.extract_strided_slice %325 {offsets = [0, 28], sizes = [4, 1], strides = [1, 1]} : vector<4x36xf32> to vector<4x1xf32>
    %576 = vector.extract_strided_slice %574 {offsets = [0, 0], sizes = [1, 256], strides = [1, 1]} : vector<4x256xf32> to vector<1x256xf32>
    %577 = vector.broadcast %575 : vector<4x1xf32> to vector<4x256xf32>
    %578 = vector.broadcast %576 : vector<1x256xf32> to vector<4x256xf32>
    %579 = arith.mulf %577, %578 : vector<4x256xf32>
    %580 = arith.addf %563, %579 : vector<4x256xf32>
    %581 = vector.extract_strided_slice %325 {offsets = [0, 29], sizes = [4, 1], strides = [1, 1]} : vector<4x36xf32> to vector<4x1xf32>
    %582 = vector.extract_strided_slice %574 {offsets = [1, 0], sizes = [1, 256], strides = [1, 1]} : vector<4x256xf32> to vector<1x256xf32>
    %583 = vector.broadcast %581 : vector<4x1xf32> to vector<4x256xf32>
    %584 = vector.broadcast %582 : vector<1x256xf32> to vector<4x256xf32>
    %585 = arith.mulf %583, %584 : vector<4x256xf32>
    %586 = arith.addf %580, %585 : vector<4x256xf32>
    %587 = vector.extract_strided_slice %325 {offsets = [0, 30], sizes = [4, 1], strides = [1, 1]} : vector<4x36xf32> to vector<4x1xf32>
    %588 = vector.extract_strided_slice %574 {offsets = [2, 0], sizes = [1, 256], strides = [1, 1]} : vector<4x256xf32> to vector<1x256xf32>
    %589 = vector.broadcast %587 : vector<4x1xf32> to vector<4x256xf32>
    %590 = vector.broadcast %588 : vector<1x256xf32> to vector<4x256xf32>
    %591 = arith.mulf %589, %590 : vector<4x256xf32>
    %592 = arith.addf %586, %591 : vector<4x256xf32>
    %593 = vector.extract_strided_slice %325 {offsets = [0, 31], sizes = [4, 1], strides = [1, 1]} : vector<4x36xf32> to vector<4x1xf32>
    %594 = vector.extract_strided_slice %574 {offsets = [3, 0], sizes = [1, 256], strides = [1, 1]} : vector<4x256xf32> to vector<1x256xf32>
    %595 = vector.broadcast %593 : vector<4x1xf32> to vector<4x256xf32>
    %596 = vector.broadcast %594 : vector<1x256xf32> to vector<4x256xf32>
    %597 = arith.mulf %595, %596 : vector<4x256xf32>
    %598 = arith.addf %592, %597 : vector<4x256xf32>
    %599 = vector.extract_strided_slice %348 {offsets = [0, 16], sizes = [4, 240], strides = [1, 1]} : vector<4x256xf32> to vector<4x240xf32>
    %600 = vector.extract_strided_slice %348 {offsets = [0, 0], sizes = [4, 16], strides = [1, 1]} : vector<4x256xf32> to vector<4x16xf32>
    %601 = tpu.concatenate %599, %600 in 1 : vector<4x240xf32>, vector<4x16xf32> -> vector<4x256xf32>
    %c15_i32_32 = arith.constant 15 : i32
    %602 = vector.broadcast %c15_i32_32 : i32 to vector<1x256xi32>
    %603 = arith.cmpi eq, %0, %602 : vector<1x256xi32>
    %604 = vector.extract_strided_slice %348 {offsets = [0, 240], sizes = [4, 16], strides = [1, 1]} : vector<4x256xf32> to vector<4x16xf32>
    %605 = vector.extract_strided_slice %348 {offsets = [0, 0], sizes = [4, 240], strides = [1, 1]} : vector<4x256xf32> to vector<4x240xf32>
    %606 = tpu.concatenate %604, %605 in 1 : vector<4x16xf32>, vector<4x240xf32> -> vector<4x256xf32>
    %607 = vector.shape_cast %603 : vector<1x256xi1> to vector<1x256xi1>
    %608 = vector.broadcast %607 : vector<1x256xi1> to vector<4x256xi1>
    %609 = arith.select %608, %606, %601 : vector<4x256xi1>, vector<4x256xf32>
    %610 = vector.extract_strided_slice %325 {offsets = [0, 32], sizes = [4, 1], strides = [1, 1]} : vector<4x36xf32> to vector<4x1xf32>
    %611 = vector.extract_strided_slice %609 {offsets = [0, 0], sizes = [1, 256], strides = [1, 1]} : vector<4x256xf32> to vector<1x256xf32>
    %612 = vector.broadcast %610 : vector<4x1xf32> to vector<4x256xf32>
    %613 = vector.broadcast %611 : vector<1x256xf32> to vector<4x256xf32>
    %614 = arith.mulf %612, %613 : vector<4x256xf32>
    %615 = arith.addf %598, %614 : vector<4x256xf32>
    %616 = vector.extract_strided_slice %325 {offsets = [0, 33], sizes = [4, 1], strides = [1, 1]} : vector<4x36xf32> to vector<4x1xf32>
    %617 = vector.extract_strided_slice %609 {offsets = [1, 0], sizes = [1, 256], strides = [1, 1]} : vector<4x256xf32> to vector<1x256xf32>
    %618 = vector.broadcast %616 : vector<4x1xf32> to vector<4x256xf32>
    %619 = vector.broadcast %617 : vector<1x256xf32> to vector<4x256xf32>
    %620 = arith.mulf %618, %619 : vector<4x256xf32>
    %621 = arith.addf %615, %620 : vector<4x256xf32>
    %622 = vector.extract_strided_slice %325 {offsets = [0, 34], sizes = [4, 1], strides = [1, 1]} : vector<4x36xf32> to vector<4x1xf32>
    %623 = vector.extract_strided_slice %609 {offsets = [2, 0], sizes = [1, 256], strides = [1, 1]} : vector<4x256xf32> to vector<1x256xf32>
    %624 = vector.broadcast %622 : vector<4x1xf32> to vector<4x256xf32>
    %625 = vector.broadcast %623 : vector<1x256xf32> to vector<4x256xf32>
    %626 = arith.mulf %624, %625 : vector<4x256xf32>
    %627 = arith.addf %621, %626 : vector<4x256xf32>
    %628 = vector.extract_strided_slice %325 {offsets = [0, 35], sizes = [4, 1], strides = [1, 1]} : vector<4x36xf32> to vector<4x1xf32>
    %629 = vector.extract_strided_slice %609 {offsets = [3, 0], sizes = [1, 256], strides = [1, 1]} : vector<4x256xf32> to vector<1x256xf32>
    %630 = vector.broadcast %628 : vector<4x1xf32> to vector<4x256xf32>
    %631 = vector.broadcast %629 : vector<1x256xf32> to vector<4x256xf32>
    %632 = arith.mulf %630, %631 : vector<4x256xf32>
    %633 = arith.addf %627, %632 : vector<4x256xf32>
    %cst_33 = arith.constant 5.000000e-01 : f32
    %634 = vector.broadcast %cst_33 : f32 to vector<4x256xf32>
    %635 = arith.mulf %633, %634 : vector<4x256xf32>
    %636 = arith.addf %635, %3 : vector<4x256xf32>
    %cst_34 = arith.constant 0.000000e+00 : f32
    %637 = vector.broadcast %cst_34 : f32 to vector<4x256xf32>
    %638 = arith.cmpf ogt, %636, %637 : vector<4x256xf32>
    %cst_35 = arith.constant 0.000000e+00 : f32
    %639 = vector.broadcast %cst_35 : f32 to vector<4x256xf32>
    %640 = arith.minimumf %636, %639 : vector<4x256xf32>
    %641 = math.exp %640 : vector<4x256xf32>
    %cst_36 = arith.constant 1.000000e+00 : f32
    %642 = vector.broadcast %cst_36 : f32 to vector<4x256xf32>
    %643 = arith.subf %641, %642 : vector<4x256xf32>
    %cst_37 = arith.constant 1.67326319 : f32
    %644 = vector.broadcast %cst_37 : f32 to vector<4x256xf32>
    %645 = arith.mulf %644, %643 : vector<4x256xf32>
    %646 = arith.select %638, %636, %645 : vector<4x256xi1>, vector<4x256xf32>
    %cst_38 = arith.constant 1.05070102 : f32
    %647 = vector.broadcast %cst_38 : f32 to vector<4x256xf32>
    %648 = arith.mulf %647, %646 : vector<4x256xf32>
    %c0_39 = arith.constant 0 : index
    %c0_40 = arith.constant 0 : index
    %c0_41 = arith.constant 0 : index
    %649 = vector.load %arg7[%c0_39, %c0_40, %c0_41] : memref<1x4x256xf32, #tpu.memory_space<vmem>>, vector<1x4x256xf32>
    %650 = vector.shape_cast %649 : vector<1x4x256xf32> to vector<4x256xf32>
    %651 = vector.shape_cast %648 : vector<4x256xf32> to vector<1x4x256xf32>
    tpu.vector_store %arg7[%c0_39, %c0_40, %c0_41], %651 {strides = array<i32>} : memref<1x4x256xf32, #tpu.memory_space<vmem>>, vector<1x4x256xf32>,
    return
  }
  func.func @transform_0(%arg0: i32) -> (i32, i32) {
    %c0_i32 = arith.constant 0 : i32
    %c0_i32_0 = arith.constant 0 : i32
    %c0_i32_1 = arith.constant 0 : i32
    return %c0_i32, %c0_i32_0 : i32, i32
  }
  func.func @transform_1(%arg0: i32) -> (i32, i32, i32) {
    %c0_i32 = arith.constant 0 : i32
    %c0_i32_0 = arith.constant 0 : i32
    %c0_i32_1 = arith.constant 0 : i32
    return %arg0, %c0_i32, %c0_i32_0 : i32, i32, i32
  }
  func.func @transform_2(%arg0: i32) -> (i32, i32) {
    %c0_i32 = arith.constant 0 : i32
    %c0_i32_0 = arith.constant 0 : i32
    %c0_i32_1 = arith.constant 0 : i32
    return %c0_i32, %c0_i32_0 : i32, i32
  }
  func.func @transform_3(%arg0: i32) -> (i32, i32) {
    %c0_i32 = arith.constant 0 : i32
    %c0_i32_0 = arith.constant 0 : i32
    %c0_i32_1 = arith.constant 0 : i32
    return %c0_i32, %c0_i32_0 : i32, i32
  }
  func.func @transform_4(%arg0: i32) -> (i32, i32) {
    %c0_i32 = arith.constant 0 : i32
    %c0_i32_0 = arith.constant 0 : i32
    %c0_i32_1 = arith.constant 0 : i32
    return %c0_i32, %c0_i32_0 : i32, i32
  }
  func.func @transform_5(%arg0: i32) -> (i32, i32) {
    %c0_i32 = arith.constant 0 : i32
    %c0_i32_0 = arith.constant 0 : i32
    %c0_i32_1 = arith.constant 0 : i32
    return %c0_i32, %c0_i32_0 : i32, i32
  }
  func.func @transform_6(%arg0: i32) -> (i32, i32, i32) {
    %c0_i32 = arith.constant 0 : i32
    %c0_i32_0 = arith.constant 0 : i32
    %c0_i32_1 = arith.constant 0 : i32
    return %arg0, %c0_i32, %c0_i32_0 : i32, i32, i32
  }
}

</mosaic_0001>

<bundles_post_ra>
// kernel: tpu_custom_call.1
= control target key start
LH: loop header
LB: loop body
LE: loop exit
PB: predicated region body
PF: predicated region fallthrough
CT: control target
= control target key end

     0   :  { %11 = vsyncpa [#allocation3], 0  ;;  %s3209_s0 = inlined_call_operand.vmem [shape: s32[2,256], index: 0, kind: input, shape index: {}]   ;;  %s3210_s1 = inlined_call_operand.hbm [shape: f32[2,4,256], index: 1, kind: input, shape index: {}]   ;;  %s3211_s2 = inlined_call_operand.vmem [shape: f32[4,36], index: 2, kind: input, shape index: {}]   ;;  %s3212_s3 = inlined_call_operand.vmem [shape: f32[4,1], index: 3, kind: input, shape index: {}]   ;;  %s3213_s4 = inlined_call_operand.vmem [shape: f32[4,36], index: 4, kind: input, shape index: {}]   ;;  %s3214_s5 = inlined_call_operand.vmem [shape: f32[4,1], index: 5, kind: input, shape index: {}]   ;;  %s3215_s6 = inlined_call_operand.hbm [shape: f32[2,4,256], index: 6, kind: output, shape index: {}]  }
   0x1   :  { %13 = vsyncpa [#allocation3 + $0x1], 0 }
   0x2   :  { %14 = vsyncpa [#allocation4], 0 }
   0x3   :  { %16 = vsyncpa [#allocation4 + $0x1], 0  ;;  %s2216_s21 = smov 0   ;;  %s2218_s22 = smov 0  }
   0x4   :  { %s2220_s23 = smov 0   ;;  %s2222_s24 = smov 0  }
   0x5 LB: > { %s2237_s25 = sadd.s32 4294967295, %s2137_s24   ;;  %s1849_s26 = sadd.s32 4294967294, %s2137_s24   ;;  %s2137_s24 = sphi %s2222_s24, %s3322_s24   ;;  %s2133_s23 = sphi %s2220_s23, %s3321_s23   ;;  %s2129_s22 = sphi %s2218_s22, %s3320_s22   ;;  %s2125_s21 = sphi %s2216_s21, %s3319_s21  }
   0x6   : > { %s2241_s27 = sadd.s32 1, %s2137_s24   ;;  %s50_s28 = sadd.s32 1, %s2133_s23 }
   0x7   : > { %s47_s29 = ssub.s32 %s2137_s24, %s2241_s27  ;;  %p57_p0 = scmp.ne.s32.totalorder %s2133_s23, %s2129_s22 }
   0x8   : > { %p48_p1 = scmp.eq.s32.totalorder %s47_s29, 0  ;;  %p58_p2 = scmp.eq.s32.totalorder %s2137_s24, 0 }
   0x9   : > { %p63_p3 = scmp.ne.s32.totalorder %s2129_s22, %s2125_s21  ;;  %p64_p4 = scmp.eq.s32.totalorder %s2237_s25, 0 }
   0xa   : > { %s2253_s30 = scalar_select %p48_p1, %s2133_s23, %s50_s28  }
   0xb   : > { %p2255_p5 = por %p58_p2, %p57_p0  ;;  %p2259_p6 = por %p64_p4, %p63_p3 }
   0xc   : > { %p171_p7 = scmp.eq.s32.totalorder %s2237_s25, 1  ;;  %p177_p8 = scmp.eq.s32.totalorder %s1849_s26, 1 }
   0xd   : > { %p1882_p10 = scmp.lt.s32.totalorder %s2137_s24, 2  ;;  %s212_s11 = sand.u32 1, %s2133_s23  }
   0xe   : > { %p2266_p11 = por %p171_p7, %p57_p0  ;;  %p2270_p12 = por %p177_p8, %p63_p3 }
   0xf   : > { %s1868_s12 = sshll.u32 %s2137_s24, 7  ;;  %s1852_s13 = sshll.u32 %s212_s11, 3 }
  0x10   : > { %s3257_s9 = scalar_select %p2266_p11, 1, 0 }
  0x11   : > { %s3258_s10 = scalar_select %p2270_p12, 1, 0 }
  0x12   : > { %s2279_s16 = scalar_lea.hbm %s3210_s1, %s1868_s12  ;;  %s216_s17 = scalar_lea.vmem [#allocation2], %s1852_s13 }
  0x13   : > { %s224_s18 = sshll.u32 %s216_s17, 4  ;;  %p2283_p13 = pnand %p1882_p10, %p2255_p5  ;;  %s2287_s18 = int_to_ptr.vmem [resolvable:$true] %s224_s18 }
  0x14   : > { %s213_s20 = scalar_lea.sflag [#allocation3], %s212_s11  ;;  %s2041_s26 = scalar_lea.hbm %s2279_s16, 128 }
  0x15   : > { %p2042_p2 = scmp.ne.s32.totalorder %s2279_s16, %s2041_s26  ;;  %p2043_p3 = pneg %p2283_p13 }
  0x16   : > { %s2046_s7 = scalar_lea.hbm %s3210_s1, 256  ;;  %p2047_p5 = scmp.lt.u32.totalorder %s2279_s16, %s3210_s1 }
  0x17   : > { %p2044_p4 = pnand %p2043_p3, %p2042_p2  ;;  %p2048_p8 = scmp.lt.u32.totalorder %s2046_s7, %s2041_s26 }
  0x18   : > { %p2050_p9 = scmp.lt.u32.totalorder %s2041_s26, %s2279_s16 }
  0x19   : > { %p2045_p7 = pneg %p2044_p4  ;;  %p2049_p10 = por %p2048_p8, %p2047_p5 }
  0x1b   : > { %p2051_p0 = por %p2050_p9, %p2049_p10 }
  0x1d   : > { %p2052_p1 = pnand %p2051_p0, %p2045_p7 }
  0x1f   : > { %2055 = shalt.err (!%p2052_p1)
}
  0x20   : > { %s2056_s11 = scalar_lea.vmem %s2287_s18, 128  ;;  %s2139_s14 = smov [#allocation2]  }
  0x21   : > { %p2057_p2 = scmp.ne.s32.totalorder %s2287_s18, %s2056_s11  ;;  %s2061_s15 = sshll.u32 %s2139_s14, 4  ;;  %s2062_s15 = int_to_ptr.vmem [resolvable:$false] %s2061_s15 }
  0x22   : > { %s2063_s17 = scalar_lea.vmem %s2062_s15, 256  ;;  %p2064_p11 = scmp.lt.s32.totalorder %s2287_s18, %s2062_s15 }
  0x23   : > { %p2059_p4 = pnand %p2057_p2, %p2043_p3  ;;  %p2065_p5 = scmp.lt.s32.totalorder %s2063_s17, %s2056_s11 }
  0x25   : > { %p2060_p12 = pneg %p2059_p4  ;;  %p2066_p8 = por %p2065_p5, %p2064_p11 }
  0x27   : > { %p2067_p9 = pnand %p2066_p8, %p2060_p12 }
  0x29   : > { %2070 = shalt.err (!%p2067_p9)
}
  0x2a   : > { %1877 = dma.hbm_to_vmem [thread:$0]  (!%p2283_p13), %s2279_s16, 128, %s2287_s18, %s213_s20  }
  0x2b   : > { %p3260_p0 = scmp.lt.s32.totalorder %s2137_s24, 3  ;;  %p3261_p1 = scmp.ge.s32.totalorder %s2137_s24, 1 }
  0x2d   : > { %p230_p3 = pnand %p3261_p1, %p3260_p0 }
  0x2f   : > { %233 = sbr.rel (%p230_p3) target bundleno = 830 (0x33e), region = 44 }
  0x36   : > { %s2321_s26 = sand.u32 1, %s2129_s22  }
  0x37   : > { %s1856_s28 = sshll.u32 %s2321_s26, 3  ;;  %s236_s29 = scalar_lea.sflag [#allocation3], %s2321_s26 }
  0x38   : > { %s2327_s19 = scalar_lea.vmem [#allocation2], %s1856_s28 }
  0x39   : > { %2116 = dma.done.wait (%p2259_p6), %s236_s29, 128  }
  0x3a   : > { %2118 = vsyncadd (%p2259_p6), %s236_s29, 4294967168  ;;  %v3253_v0 = vmov 0   ;;  %v2336_v1 = vld [vmem:[%s2327_s19] sm:$0xff]  ;;  %s2141_s16 = smov 127   ;;  %s2142_s18 = smov 1   ;;  %v3251_v5 = vmov 1   ;;  %v298_v16 = vlaneseq }
  0x3b   : > { %1957 = vset.pattern.permute.xlu1 %v3253_v0  ;;  %1956 = vset.pattern.permute.xlu0 %v3253_v0  ;;  %v2342_v2 = vcombine.high %v2336_v1, %v2336_v1  ;;  %v273_v3 = vld [vmem:[%s3212_s3] sm:$0xf]  ;;  %v3249_v6 = vmov 2   ;;  %v3252_v7 = vmov 3   ;;  %v3246_v8 = vmov 5   ;;  %s2148_s13 = smov 112  }
  0x3c   : > { %287 = vrot.lane.b32.xlu1 %v2336_v1, %s2141_s16  ;;  %v2356_v4 = vld [vmem:[%s3211_s2] sm:$0xf]  ;;  %v3247_v9 = vmov 4   ;;  %v3250_v10 = vmov 6   ;;  %s2150_s11 = smov 16   ;;  %v3244_v11 = vmov 7  }
  0x3d   : > { %3262 = vst [vmem:[#allocation8_spill] sm:$0xff] %v2342_v2  ;;  %276 = vrot.lane.b32.xlu0 %v2342_v2, %s2142_s18  ;;  %v3248_v12 = vmov 9   ;;  %v3245_v13 = vmov 10   ;;  %v3243_v14 = vmov 8   ;;  %v3242_v15 = vmov 11   ;;  %s1765_s15 = scalar_lea.sflag [#allocation4], %s2321_s26 }
  0x3e   : > { %v1858_v17 = vld [vmem:[%s3209_s0 + $0x1] ss:$2 sm:$0x3]  ;;  %v2390_v18 = vshrl.u32 %v298_v16, 7  ;;  %vm291_vm1 = vcmask 1039360   ;;  %vm281_vm2 = vcmask 7168  }
  0x3f   : > { %vm286_vm0 = vcmp.eq.s32.totalorder %v1858_v17, 0  ;;  %vm310_vm5 = vcmp.eq.s32.totalorder %v1858_v17, 15  ;;  %v3241_v37 = vmov 12   ;;  %v3240_v39 = vmov 13   ;;  %p3316_p11 = scmp.ne.s32.totalorder %s3257_s9, 0 }
  0x40   : > { %289 = vrot.lane.b32.xlu1 %v2342_v2, %s2141_s16  ;;  %v2393_v19 = vsub.s32 0, %v2390_v18  ;;  %v2396_v20 = vsub.s32 1, %v2390_v18  ;;  %v297_v21 = vsel %vm286_vm0, 1, %v3253_v0  ;;  %v311_v36 = vsel %vm310_vm5, 1, %v3253_v0 }
  0x41   : > { %279 = vrot.lane.b32.xlu0 %v2336_v1, %s2142_s18  ;;  %v3239_v41 = vmov 14   ;;  %v3238_v44 = vmov 16   ;;  %v3237_v45 = vmov 15   ;;  %v3236_v48 = vmov 19  }
  0x42   : > { %v301_v23 = vrot.slane %v297_v21, %v2393_v19  ;;  %v305_v24 = vrot.slane %v297_v21, %v2396_v20  ;;  %v315_v38 = vrot.slane %v311_v36, %v2393_v19  ;;  %v319_v43 = vrot.slane %v311_v36, %v2396_v20 }
  0x43   : > { %v3235_v49 = vmov 17   ;;  %v3234_v50 = vmov 22   ;;  %v3233_v51 = vmov 25   ;;  %v3232_v52 = vmov 28  }
  0x44   : > { %326 = vperm.xlu1 %1957, %v273_v3   ;;  %vm2401_vm3 = vcmp.eq.s32.totalorder %v301_v23, 1  ;;  %vm2405_vm4 = vcmp.eq.s32.totalorder %v305_v24, 1  ;;  %vm2434_vm6 = vcmp.eq.s32.totalorder %v315_v38, 1  ;;  %vm2453_vm7 = vcmp.eq.s32.totalorder %v319_v43, 1 }
  0x45   : > { %368 = vperm.xlu0 %1956, %v2356_v4   ;;  %v3231_v53 = vmov 18   ;;  %v3230_v54 = vmov 31   ;;  %v3229_v55 = vmov 20   ;;  %v3228_v56 = vmov 34  }
  0x46   : > { %v3227_v57 = vmov 21   ;;  %v3224_v58 = vmov 23   ;;  %v3223_v59 = vmov 24   ;;  %v3222_v60 = vmov 26  }
  0x47   : > { %v3221_v61 = vmov 27   ;;  %v3220_v63 = vmov 29   ;;  %v3219_v16 = vmov 30   ;;  %v3218_v21 = vmov 32  }
  0x48   : > { %1958 = vset.pattern.permute.xlu1 %v3251_v5  ;;  %v3225_v24 = vmov 35   ;;  %vm337_vm9 = vcmask 130048   ;;  %vm347_vm10 = vcmask 916480   ;;  %v3291_v27 = vmov 12  }
  0x49   : > { %384 = vperm.xlu1 %1958, %v2356_v4   ;;  %1959 = vset.pattern.permute.xlu0 %v3249_v6  ;;  %v3292_v28 = vmov 13   ;;  %v3299_v46 = vmov 25  }
  0x4a   : > { %400 = vperm.xlu0 %1959, %v2356_v4  }
  0x4d   : > { %1960 = vset.pattern.permute.xlu1 %v3252_v7 }
  0x4e   : > { %416 = vperm.xlu1 %1960, %v2356_v4   ;;  %1962 = vset.pattern.permute.xlu0 %v3246_v8 }
  0x4f   : > { %468 = vperm.xlu0 %1962, %v2356_v4  }
  0x52   : > { %1961 = vset.pattern.permute.xlu1 %v3247_v9 }
  0x53   : > { %452 = vperm.xlu1 %1961, %v2356_v4   ;;  %440 = vrot.lane.b32.xlu0 %v2336_v1, %s2148_s13 }
  0x54   : > { %1963 = vset.pattern.permute.xlu0 %v3250_v10 }
  0x57   : > { %431 = vrot.lane.b32.xlu1 %v2342_v2, %s2150_s11  ;;  %484 = vperm.xlu0 %1963, %v2356_v4  }
  0x58   : > { %1964 = vset.pattern.permute.xlu1 %v3244_v11 }
  0x5b   : > { %434 = vrot.lane.b32.xlu1 %v2336_v1, %s2150_s11  ;;  %1966 = vset.pattern.permute.xlu0 %v3248_v12 }
  0x5c   : > { %554 = vperm.xlu0 %1966, %v2356_v4  }
  0x5f   : > { %442 = vrot.lane.b32.xlu1 %v2342_v2, %s2148_s13 }
  0x60   : > { %1967 = vset.pattern.permute.xlu0 %v3245_v13 }
  0x63   : > { %500 = vperm.xlu1 %1964, %v2356_v4  }
  0x67   : > { %1965 = vset.pattern.permute.xlu1 %v3243_v14 }
  0x68   : > { %538 = vperm.xlu1 %1965, %v2356_v4  }
  0x6c   : > { %1968 = vset.pattern.permute.xlu1 %v3242_v15 }
  0xae   : > { %v288_v22 = vpop.permute.xlu1 %287 }
  0xaf   : > { %v277_v25 = vpop.permute.xlu0 %276 }
  0xb2   : > { %v290_v26 = vpop.permute.xlu1 %289 }
  0xb3   : > { %v280_v29 = vpop.permute.xlu0 %279  ;;  %v292_v30 = vsel %vm291_vm1, %v288_v22, %v290_v26  ;;  %v296_v31 = vsel %vm291_vm1, %v290_v26, %v288_v22  ;;  %v3217_v22 = vmov 33  }
  0xb4   : > { %v282_v32 = vsel %vm281_vm2, %v280_v29, %v277_v25  ;;  %v285_v33 = vsel %vm281_vm2, %v277_v25, %v280_v29 }
  0xb5   : > { %v2415_v34 = vsel %vm2401_vm3, %v292_v30, %v285_v33  ;;  %v2419_v35 = vsel %vm2405_vm4, %v296_v31, %v282_v32  ;;  %v2443_v42 = vsel %vm2434_vm6, %v285_v33, %v292_v30  ;;  %v2460_v47 = vsel %vm2453_vm7, %v282_v32, %v296_v31 }
  0xb6   : > { %331 = vrot.lane.b32.xlu0 %v2419_v35, %s2150_s11  ;;  %335 = vrot.lane.b32.xlu1 %v2415_v34, %s2150_s11 }
  0xba   : > { %343 = vrot.lane.b32.xlu0 %v2415_v34, %s2148_s13  ;;  %586 = vperm.xlu1 %1968, %v2356_v4  }
  0xbe   : > { %570 = vperm.xlu0 %1967, %v2356_v4   ;;  %1969 = vset.pattern.permute.xlu1 %v3241_v37 }
  0xbf   : > { %602 = vperm.xlu1 %1969, %v2356_v4  }
  0xc2   : > { %1970 = vset.pattern.permute.xlu0 %v3240_v39 }
  0xc3   : > { %618 = vperm.xlu0 %1970, %v2356_v4   ;;  %1971 = vset.pattern.permute.xlu1 %v3239_v41  ;;  %v2497_v62 = vpop.permute.xlu1 %326 }
  0xc4   : > { %634 = vperm.xlu1 %1971, %v2356_v4   ;;  %v369_v26 = vpop.permute.xlu0 %368 }
  0xc7   : > { %526 = vrot.lane.b32.xlu0 %v2443_v42, %s2148_s13 }
  0xc8   : > { %345 = vrot.lane.b32.xlu1 %v2419_v35, %s2148_s13  ;;  %1973 = vset.pattern.permute.xlu0 %v3238_v44  ;;  %v2501_v3 = vpop.permute.xlu1 %384 }
  0xc9   : > { %1972 = vset.pattern.permute.xlu1 %v3237_v45  ;;  %v401_v30 = vpop.permute.xlu0 %400  ;;  %v2597_v45 = vsub.s32 3, %v2390_v18 }
  0xcb   : > { %666 = vperm.xlu0 %1973, %v2356_v4  }
  0xcc   : > { %650 = vperm.xlu1 %1972, %v2356_v4  }
  0xcd   : > { %v2505_v17 = vpop.permute.xlu1 %416 }
  0xce   : > { %v2516_v32 = vpop.permute.xlu0 %468 }
  0xcf   : > { %1976 = vset.pattern.permute.xlu0 %v3236_v48 }
  0xd0   : > { %744 = vperm.xlu0 %1976, %v2356_v4   ;;  %516 = vrot.lane.b32.xlu1 %v2460_v47, %s2150_s11 }
  0xd1   : > { %1974 = vset.pattern.permute.xlu1 %v3235_v49 }
  0xd2   : > { %v2510_v23 = vpop.permute.xlu1 %452  ;;  %v441_v38 = vpop.permute.xlu0 %440 }
  0xd4   : > { %1979 = vset.pattern.permute.xlu0 %v3234_v50  ;;  %520 = vrot.lane.b32.xlu1 %v2443_v42, %s2150_s11 }
  0xd5   : > { %802 = vperm.xlu0 %1979, %v2356_v4  }
  0xd6   : > { %v432_v25 = vpop.permute.xlu1 %431 }
  0xd8   : > { %528 = vrot.lane.b32.xlu1 %v2460_v47, %s2148_s13 }
  0xd9   : > { %1982 = vset.pattern.permute.xlu0 %v3233_v51 }
  0xda   : > { %864 = vperm.xlu0 %1982, %v2356_v4   ;;  %v435_v29 = vpop.permute.xlu1 %434 }
  0xdc   : > { %692 = vperm.xlu1 %1974, %v2356_v4  }
  0xde   : > { %1985 = vset.pattern.permute.xlu0 %v3232_v52  ;;  %v443_v31 = vpop.permute.xlu1 %442 }
  0xdf   : > { %914 = vperm.xlu0 %1985, %v2356_v4  }
  0xe0   : > { %1975 = vset.pattern.permute.xlu1 %v3231_v53  ;;  %v2559_v53 = vsel %vm347_vm10, %v443_v31, %v441_v38 }
  0xe1   : > { %718 = vperm.xlu1 %1975, %v2356_v4  }
  0xe2   : > { %v2518_v33 = vpop.permute.xlu1 %500 }
  0xe3   : > { %1988 = vset.pattern.permute.xlu0 %v3230_v54  ;;  %v2553_v54 = vsel %vm337_vm9, %v432_v25, %v435_v29 }
  0xe4   : > { %962 = vperm.xlu0 %1988, %v2356_v4  }
  0xe5   : > { %1977 = vset.pattern.permute.xlu1 %v3229_v55  ;;  %v2550_v55 = vsel %vm337_vm9, %v435_v29, %v432_v25  ;;  %v2574_v29 = vsub.s32 2, %v2390_v18 }
  0xe6   : > { %770 = vperm.xlu1 %1977, %v2356_v4  }
  0xe7   : > { %v2520_v36 = vpop.permute.xlu1 %538 }
  0xe8   : > { %1991 = vset.pattern.permute.xlu0 %v3228_v56 }
  0xe9   : > { %1012 = vperm.xlu0 %1991, %v2356_v4  }
  0xea   : > { %1978 = vset.pattern.permute.xlu1 %v3227_v57 }
  0xeb   : > { %786 = vperm.xlu1 %1978, %v2356_v4  }
  0xed   : > { %1994 = vset.pattern.permute.xlu0 %v3253_v0 }
  0xef   : > { %1980 = vset.pattern.permute.xlu1 %v3224_v58 }
  0xf0   : > { %818 = vperm.xlu1 %1980, %v2356_v4  }
  0xf4   : > { %1981 = vset.pattern.permute.xlu1 %v3223_v59 }
  0xf5   : > { %848 = vperm.xlu1 %1981, %v2356_v4  }
  0xf9   : > { %1983 = vset.pattern.permute.xlu1 %v3222_v60 }
  0xfa   : > { %880 = vperm.xlu1 %1983, %v2356_v4  }
  0xfe   : > { %1984 = vset.pattern.permute.xlu1 %v3221_v61 }
  0xff   : > { %896 = vperm.xlu1 %1984, %v2356_v4  }
 0x103   : > { %1986 = vset.pattern.permute.xlu1 %v3220_v63 }
 0x104   : > { %930 = vperm.xlu1 %1986, %v2356_v4  }
 0x108   : > { %1987 = vset.pattern.permute.xlu1 %v3219_v16 }
 0x109   : > { %946 = vperm.xlu1 %1987, %v2356_v4  }
 0x10d   : > { %1989 = vset.pattern.permute.xlu1 %v3218_v21 }
 0x10e   : > { %980 = vperm.xlu1 %1989, %v2356_v4  }
 0x112   : > { %1990 = vset.pattern.permute.xlu1 %v3217_v22  ;;  %v2522_v22 = vpop.permute.xlu0 %484 }
 0x113   : > { %996 = vperm.xlu1 %1990, %v2356_v4  }
 0x116   : > { %v2531_v16 = vpop.permute.xlu0 %554 }
 0x117   : > { %1992 = vset.pattern.permute.xlu1 %v3225_v24 }
 0x118   : > { %1028 = vperm.xlu1 %1992, %v2356_v4   ;;  %v2527_v4 = vld [vmem:[%s3209_s0] ss:$2 sm:$0x3] }
 0x119   : > { %vm342_vm8 = vcmp.eq.s32.totalorder %v2527_v4, 0  ;;  %vm833_vm13 = vcmp.eq.s32.totalorder %v2527_v4, 15 }
 0x11a   : > { %v353_v61 = vsel %vm342_vm8, 1, %v3253_v0 }
 0x11b   : > { %v357_v59 = vrot.slane %v353_v61, %v2393_v19  ;;  %v361_v58 = vrot.slane %v353_v61, %v2396_v20  ;;  %v2556_v61 = vsel %vm347_vm10, %v441_v38, %v443_v31 }
 0x11c   : > { %1993 = vset.pattern.permute.xlu1 %v3253_v0 }
 0x11d   : > { %vm2541_vm11 = vcmp.eq.s32.totalorder %v357_v59, 1  ;;  %vm2545_vm12 = vcmp.eq.s32.totalorder %v361_v58, 1 }
 0x11e   : > { %v449_v49 = vsel %vm2541_vm11, %v2556_v61, %v2553_v54  ;;  %v450_v48 = vsel %vm2545_vm12, %v2559_v53, %v2550_v55 }
 0x11f   : > { %v458_v10 = vrot.slane %v449_v49, %v2393_v19  ;;  %v494_v2 = vrot.slane %v450_v48, %v2574_v29 }
 0x128   : > { %v336_v43 = vpop.permute.xlu1 %335  ;;  %v332_v60 = vpop.permute.xlu0 %331 }
 0x129   : > { %v2562_v51 = vsel %vm337_vm9, %v336_v43, %v332_v60  ;;  %v2565_v58 = vsel %vm337_vm9, %v332_v60, %v336_v43 }
 0x12c   : > { %v344_v59 = vpop.permute.xlu0 %343 }
 0x139   : > { %v2529_v21 = vpop.permute.xlu1 %586 }
 0x13d   : > { %v2599_v44 = vpop.permute.xlu0 %570 }
 0x13e   : > { %v2534_v63 = vpop.permute.xlu1 %602 }
 0x143   : > { %v2539_v24 = vpop.permute.xlu1 %634 }
 0x147   : > { %v346_v52 = vpop.permute.xlu1 %345 }
 0x148   : > { %v2568_v50 = vsel %vm347_vm10, %v344_v59, %v346_v52  ;;  %v2571_v25 = vsel %vm347_vm10, %v346_v52, %v344_v59 }
 0x149   : > { %v364_v31 = vsel %vm2541_vm11, %v2568_v50, %v2565_v58  ;;  %v365_v60 = vsel %vm2545_vm12, %v2571_v25, %v2562_v51 }
 0x14a   : > { %v374_v38 = vrot.slane %v364_v31, %v2393_v19  ;;  %v378_v43 = vrot.slane %v365_v60, %v2393_v19  ;;  %v390_v52 = vrot.slane %v364_v31, %v2396_v20  ;;  %v394_v59 = vrot.slane %v365_v60, %v2396_v20 }
 0x14b   : > { %v2601_v41 = vpop.permute.xlu1 %650  ;;  %v406_v15 = vrot.slane %v364_v31, %v2574_v29  ;;  %v410_v14 = vrot.slane %v365_v60, %v2574_v29  ;;  %v422_v11 = vrot.slane %v364_v31, %v2597_v45  ;;  %v426_v13 = vrot.slane %v365_v60, %v2597_v45 }
 0x14c   : > { %v379_v39 = vmul.f32 %v374_v38, %v369_v26  ;;  %v380_v37 = vmul.f32 %v378_v43, %v369_v26  ;;  %v395_v12 = vmul.f32 %v390_v52, %v2501_v3  ;;  %v396_v6 = vmul.f32 %v394_v59, %v2501_v3 }
 0x14d   : > { %v462_v26 = vrot.slane %v450_v48, %v2393_v19  ;;  %v411_v7 = vmul.f32 %v406_v15, %v401_v30  ;;  %v412_v0 = vmul.f32 %v410_v14, %v401_v30  ;;  %v474_v31 = vrot.slane %v449_v49, %v2396_v20 }
 0x14e   : > { %v381_v8 = vadd.f32 %v379_v39, %v2497_v62  ;;  %v382_v9 = vadd.f32 %v380_v37, %v2497_v62  ;;  %v478_v60 = vrot.slane %v450_v48, %v2396_v20  ;;  %v2615_v39 = vpop.permute.xlu0 %618  ;;  %v427_v52 = vmul.f32 %v422_v11, %v2505_v17 }
 0x14f   : > { %v517_v38 = vpop.permute.xlu1 %516  ;;  %v428_v3 = vmul.f32 %v426_v13, %v2505_v17  ;;  %v490_v59 = vrot.slane %v449_v49, %v2574_v29  ;;  %v506_v15 = vrot.slane %v449_v49, %v2597_v45  ;;  %v496_v30 = vmul.f32 %v494_v2, %v2522_v22 }
 0x150   : > { %v397_v43 = vadd.f32 %v395_v12, %v381_v8  ;;  %v398_v5 = vadd.f32 %v396_v6, %v382_v9  ;;  %v463_v6 = vmul.f32 %v458_v10, %v2510_v23  ;;  %v464_v9 = vmul.f32 %v462_v26, %v2510_v23 }
 0x151   : > { %v495_v17 = vmul.f32 %v490_v59, %v2522_v22 }
 0x152   : > { %v413_v37 = vadd.f32 %v411_v7, %v397_v43  ;;  %v414_v62 = vadd.f32 %v412_v0, %v398_v5  ;;  %v510_v7 = vrot.slane %v450_v48, %v2597_v45  ;;  %v479_v0 = vmul.f32 %v474_v31, %v2516_v32  ;;  %v527_v43 = vpop.permute.xlu0 %526 }
 0x153   : > { %v521_v8 = vpop.permute.xlu1 %520  ;;  %v480_v5 = vmul.f32 %v478_v60, %v2516_v32  ;;  %v511_v60 = vmul.f32 %v506_v15, %v2518_v33 }
 0x154   : > { %v429_v12 = vadd.f32 %v427_v52, %v413_v37  ;;  %v430_v14 = vadd.f32 %v428_v3, %v414_v62  ;;  %v2630_v10 = vsel %vm337_vm9, %v521_v8, %v517_v38  ;;  %v2633_v23 = vsel %vm337_vm9, %v517_v38, %v521_v8 }
 0x155   : > { %v512_v2 = vmul.f32 %v510_v7, %v2518_v33 }
 0x156   : > { %v465_v11 = vadd.f32 %v463_v6, %v429_v12  ;;  %v466_v13 = vadd.f32 %v464_v9, %v430_v14 }
 0x157   : > { %v529_v49 = vpop.permute.xlu1 %528 }
 0x158   : > { %v481_v26 = vadd.f32 %v479_v0, %v465_v11  ;;  %v482_v48 = vadd.f32 %v480_v5, %v466_v13  ;;  %v2636_v31 = vsel %vm347_vm10, %v527_v43, %v529_v49  ;;  %v2639_v32 = vsel %vm347_vm10, %v529_v49, %v527_v43 }
 0x159   : > { %v535_v22 = vsel %vm2541_vm11, %v2636_v31, %v2633_v23  ;;  %v536_v38 = vsel %vm2545_vm12, %v2639_v32, %v2630_v10  ;;  %v612_v0 = vrot.slane %v2419_v35, %v2393_v19  ;;  %v675_v5 = vsub.s32 4, %v2390_v18 }
 0x15a   : > { %v497_v37 = vadd.f32 %v495_v17, %v481_v26  ;;  %v498_v62 = vadd.f32 %v496_v30, %v482_v48  ;;  %v544_v52 = vrot.slane %v535_v22, %v2393_v19  ;;  %v548_v3 = vrot.slane %v536_v38, %v2393_v19 }
 0x15b   : > { %v560_v59 = vrot.slane %v535_v22, %v2396_v20  ;;  %v564_v33 = vrot.slane %v536_v38, %v2396_v20  ;;  %v576_v8 = vrot.slane %v535_v22, %v2574_v29  ;;  %v580_v6 = vrot.slane %v536_v38, %v2574_v29  ;;  %v2657_v9 = vpop.permute.xlu1 %692 }
 0x15c   : > { %v513_v12 = vadd.f32 %v511_v60, %v497_v37  ;;  %v514_v14 = vadd.f32 %v512_v2, %v498_v62  ;;  %v549_v15 = vmul.f32 %v544_v52, %v2520_v36  ;;  %v550_v7 = vmul.f32 %v548_v3, %v2520_v36 }
 0x15d   : > { %v565_v11 = vmul.f32 %v560_v59, %v2531_v16  ;;  %v566_v13 = vmul.f32 %v564_v33, %v2531_v16  ;;  %v592_v43 = vrot.slane %v535_v22, %v2597_v45  ;;  %v596_v49 = vrot.slane %v536_v38, %v2597_v45 }
 0x15e   : > { %v551_v17 = vadd.f32 %v549_v15, %v513_v12  ;;  %v552_v30 = vadd.f32 %v550_v7, %v514_v14  ;;  %v608_v26 = vrot.slane %v2415_v34, %v2393_v19  ;;  %v628_v36 = vrot.slane %v2419_v35, %v2396_v20 }
 0x15f   : > { %v624_v48 = vrot.slane %v2415_v34, %v2396_v20  ;;  %v644_v60 = vrot.slane %v2419_v35, %v2574_v29  ;;  %v581_v22 = vmul.f32 %v576_v8, %v2599_v44  ;;  %v582_v38 = vmul.f32 %v580_v6, %v2599_v44 }
 0x160   : > { %v567_v16 = vadd.f32 %v565_v11, %v551_v17  ;;  %v568_v2 = vadd.f32 %v566_v13, %v552_v30  ;;  %v2679_v37 = vpop.permute.xlu1 %718  ;;  %v640_v62 = vrot.slane %v2415_v34, %v2574_v29  ;;  %v672_v52 = vrot.slane %v2336_v1, %v2393_v19 }
 0x161   : > { %v676_v3 = vrot.slane %v2336_v1, %v675_v5  ;;  %v701_v59 = vsub.s32 5, %v2390_v18  ;;  %v597_v14 = vmul.f32 %v592_v43, %v2529_v21  ;;  %v598_v8 = vmul.f32 %v596_v49, %v2529_v21 }
 0x162   : > { %v583_v33 = vadd.f32 %v581_v22, %v567_v16  ;;  %v584_v12 = vadd.f32 %v582_v38, %v568_v2  ;;  %v660_v44 = vrot.slane %v2419_v35, %v2597_v45  ;;  %v656_v6 = vrot.slane %v2415_v34, %v2597_v45 }
 0x163   : > { %v753_v15 = vsub.s32 7, %v2390_v18  ;;  %v727_v7 = vsub.s32 6, %v2390_v18  ;;  %v613_v5 = vmul.f32 %v608_v26, %v2534_v63  ;;  %v614_v11 = vmul.f32 %v612_v0, %v2534_v63 }
 0x164   : > { %v599_v13 = vadd.f32 %v597_v14, %v583_v33  ;;  %v600_v17 = vadd.f32 %v598_v8, %v584_v12  ;;  %v682_v30 = vrot.slane %v672_v52, %v2393_v19  ;;  %v686_v21 = vrot.slane %v676_v3, %v2393_v19  ;;  %v667_v3 = vpop.permute.xlu0 %666 }
 0x165   : > { %v698_v35 = vrot.slane %v2336_v1, %v2396_v20  ;;  %v702_v43 = vrot.slane %v2336_v1, %v701_v59  ;;  %v771_v34 = vpop.permute.xlu1 %770  ;;  %v629_v49 = vmul.f32 %v624_v48, %v2615_v39  ;;  %v630_v18 = vmul.f32 %v628_v36, %v2615_v39 }
 0x166   : > { %v615_v16 = vadd.f32 %v613_v5, %v599_v13  ;;  %v616_v26 = vadd.f32 %v614_v11, %v600_v17  ;;  %v750_v63 = vrot.slane %v2336_v1, %v2597_v45  ;;  %v754_v0 = vrot.slane %v2336_v1, %v753_v15 }
 0x167   : > { %v724_v2 = vrot.slane %v2336_v1, %v2574_v29  ;;  %v728_v22 = vrot.slane %v2336_v1, %v727_v7  ;;  %v645_v38 = vmul.f32 %v640_v62, %v2539_v24  ;;  %v646_v52 = vmul.f32 %v644_v60, %v2539_v24 }
 0x168   : > { %v631_v48 = vadd.f32 %v629_v49, %v615_v16  ;;  %v632_v59 = vadd.f32 %v630_v18, %v616_v26  ;;  %v661_v39 = vmul.f32 %v656_v6, %v2601_v41  ;;  %v662_v36 = vmul.f32 %v660_v44, %v2601_v41  ;;  %v745_v13 = vpop.permute.xlu0 %744 }
 0x169   : > { %v708_v33 = vrot.slane %v698_v35, %v2396_v20  ;;  %v712_v12 = vrot.slane %v702_v43, %v2396_v20  ;;  %v687_v14 = vmul.f32 %v682_v30, %v667_v3  ;;  %v688_v8 = vmul.f32 %v686_v21, %v667_v3 }
 0x16a   : > { %v647_v15 = vadd.f32 %v645_v38, %v631_v48  ;;  %v648_v5 = vadd.f32 %v646_v52, %v632_v59  ;;  %v787_v1 = vpop.permute.xlu1 %786  ;;  %v3275_v7 = vmov 0   ;;  %v760_v60 = vrot.slane %v750_v63, %v2597_v45 }
 0x16b   : > { %v834_v24 = vsel %vm833_vm13, 1, %v3275_v7  ;;  %v764_v62 = vrot.slane %v754_v0, %v2597_v45  ;;  %v734_v41 = vrot.slane %v724_v2, %v2574_v29  ;;  %v738_v44 = vrot.slane %v728_v22, %v2574_v29 }
 0x16c   : > { %v663_v6 = vadd.f32 %v661_v39, %v647_v15  ;;  %v664_v11 = vadd.f32 %v662_v36, %v648_v5  ;;  %v713_v21 = vmul.f32 %v708_v33, %v2657_v9  ;;  %v714_v35 = vmul.f32 %v712_v12, %v2657_v9 }
 0x16d   : > { %v838_v4 = vrot.slane %v834_v24, %v2393_v19  ;;  %v842_v43 = vrot.slane %v834_v24, %v2396_v20  ;;  %v765_v49 = vmul.f32 %v760_v60, %v745_v13  ;;  %v766_v18 = vmul.f32 %v764_v62, %v745_v13  ;;  %v803_v24 = vpop.permute.xlu0 %802 }
 0x16e   : > { %v689_v17 = vadd.f32 %v687_v14, %v663_v6  ;;  %v690_v30 = vadd.f32 %v688_v8, %v664_v11  ;;  %v739_v0 = vmul.f32 %v734_v41, %v2679_v37  ;;  %v740_v2 = vmul.f32 %v738_v44, %v2679_v37 }
 0x16f   : > { %v819_v16 = vpop.permute.xlu1 %818  ;;  %v776_v52 = vrot.slane %v2443_v42, %v2393_v19  ;;  %v780_v9 = vrot.slane %v2460_v47, %v2393_v19  ;;  %vm2733_vm14 = vcmp.eq.s32.totalorder %v838_v4, 1  ;;  %vm2737_vm15 = vcmp.eq.s32.totalorder %v842_v43, 1 }
 0x170   : > { %v715_v26 = vadd.f32 %v713_v21, %v689_v17  ;;  %v716_v63 = vadd.f32 %v714_v35, %v690_v30  ;;  %v792_v59 = vrot.slane %v2443_v42, %v2396_v20  ;;  %v796_v37 = vrot.slane %v2460_v47, %v2396_v20 }
 0x171   : > { %v781_v33 = vmul.f32 %v776_v52, %v771_v34  ;;  %v782_v12 = vmul.f32 %v780_v9, %v771_v34  ;;  %v845_v8 = vsel %vm2733_vm14, %v2565_v58, %v2568_v50  ;;  %v846_v15 = vsel %vm2737_vm15, %v2562_v51, %v2571_v25 }
 0x172   : > { %v741_v22 = vadd.f32 %v739_v0, %v715_v26  ;;  %v742_v38 = vadd.f32 %v740_v2, %v716_v63  ;;  %v808_v5 = vrot.slane %v2443_v42, %v2574_v29  ;;  %v812_v7 = vrot.slane %v2460_v47, %v2574_v29 }
 0x173   : > { %v797_v62 = vmul.f32 %v792_v59, %v787_v1  ;;  %v798_v6 = vmul.f32 %v796_v37, %v787_v1  ;;  %v824_v11 = vrot.slane %v2443_v42, %v2597_v45  ;;  %v828_v50 = vrot.slane %v2460_v47, %v2597_v45  ;;  %v865_v1 = vpop.permute.xlu0 %864 }
 0x174   : > { %v767_v39 = vadd.f32 %v765_v49, %v741_v22  ;;  %v768_v36 = vadd.f32 %v766_v18, %v742_v38  ;;  %v849_v14 = vpop.permute.xlu1 %848  ;;  %v813_v58 = vmul.f32 %v808_v5, %v803_v24  ;;  %v814_v41 = vmul.f32 %v812_v7, %v803_v24 }
 0x175   : > { %v854_v44 = vrot.slane %v845_v8, %v2393_v19  ;;  %v858_v13 = vrot.slane %v846_v15, %v2393_v19  ;;  %v829_v35 = vmul.f32 %v824_v11, %v819_v16  ;;  %v830_v4 = vmul.f32 %v828_v50, %v819_v16 }
 0x176   : > { %v783_v60 = vadd.f32 %v781_v33, %v767_v39  ;;  %v784_v34 = vadd.f32 %v782_v12, %v768_v36  ;;  %v870_v43 = vrot.slane %v845_v8, %v2396_v20  ;;  %v874_v42 = vrot.slane %v846_v15, %v2396_v20 }
 0x177   : > { %v859_v18 = vmul.f32 %v854_v44, %v849_v14  ;;  %v860_v26 = vmul.f32 %v858_v13, %v849_v14  ;;  %v911_v63 = vsel %vm2733_vm14, %v2553_v54, %v2556_v61  ;;  %v912_v0 = vsel %vm2737_vm15, %v2550_v55, %v2559_v53  ;;  %v915_v12 = vpop.permute.xlu0 %914 }
 0x178   : > { %v799_v51 = vadd.f32 %v797_v62, %v783_v60  ;;  %v800_v25 = vadd.f32 %v798_v6, %v784_v34  ;;  %v886_v16 = vrot.slane %v845_v8, %v2574_v29  ;;  %v890_v2 = vrot.slane %v846_v15, %v2574_v29 }
 0x179   : > { %v881_v17 = vpop.permute.xlu1 %880  ;;  %v875_v22 = vmul.f32 %v870_v43, %v865_v1  ;;  %v876_v38 = vmul.f32 %v874_v42, %v865_v1  ;;  %v902_v37 = vrot.slane %v845_v8, %v2597_v45  ;;  %v906_v39 = vrot.slane %v846_v15, %v2597_v45 }
 0x17a   : > { %v815_v30 = vadd.f32 %v813_v58, %v799_v51  ;;  %v816_v21 = vadd.f32 %v814_v41, %v800_v25  ;;  %v891_v61 = vmul.f32 %v886_v16, %v881_v17  ;;  %v892_v33 = vmul.f32 %v890_v2, %v881_v17 }
 0x17b   : > { %v920_v53 = vrot.slane %v911_v63, %v2393_v19  ;;  %v924_v55 = vrot.slane %v912_v0, %v2393_v19  ;;  %v936_v34 = vrot.slane %v911_v63, %v2396_v20  ;;  %v940_v8 = vrot.slane %v912_v0, %v2396_v20  ;;  %v963_v43 = vpop.permute.xlu0 %962 }
 0x17c   : > { %v831_v49 = vadd.f32 %v829_v35, %v815_v30  ;;  %v832_v47 = vadd.f32 %v830_v4, %v816_v21  ;;  %v952_v25 = vrot.slane %v911_v63, %v2574_v29  ;;  %v956_v44 = vrot.slane %v912_v0, %v2574_v29 }
 0x17d   : > { %v925_v62 = vmul.f32 %v920_v53, %v915_v12  ;;  %v926_v15 = vmul.f32 %v924_v55, %v915_v12  ;;  %v977_v4 = vsel %vm2733_vm14, %v2633_v23, %v2636_v31  ;;  %v978_v1 = vsel %vm2737_vm15, %v2630_v10, %v2639_v32 }
 0x17e   : > { %v861_v52 = vadd.f32 %v859_v18, %v831_v49  ;;  %v862_v9 = vadd.f32 %v860_v26, %v832_v47  ;;  %v897_v59 = vpop.permute.xlu1 %896  ;;  %v968_v42 = vrot.slane %v911_v63, %v2597_v45  ;;  %v972_v49 = vrot.slane %v912_v0, %v2597_v45 }
 0x17f   : > { %v907_v7 = vmul.f32 %v902_v37, %v897_v59  ;;  %v908_v24 = vmul.f32 %v906_v39, %v897_v59  ;;  %v1002_v10 = vrot.slane %v977_v4, %v2396_v20  ;;  %v1006_v32 = vrot.slane %v978_v1, %v2396_v20  ;;  %v1013_v63 = vpop.permute.xlu0 %1012 }
 0x180   : > { %v877_v36 = vadd.f32 %v875_v22, %v861_v52  ;;  %v878_v54 = vadd.f32 %v876_v38, %v862_v9  ;;  %v973_v26 = vmul.f32 %v968_v42, %v963_v43  ;;  %v974_v16 = vmul.f32 %v972_v49, %v963_v43  ;;  %v1060_v43 = vld [vmem:[%s3214_s5] sm:$0xf] }
 0x181   : > { %v986_v22 = vrot.slane %v977_v4, %v2393_v19  ;;  %v990_v38 = vrot.slane %v978_v1, %v2393_v19  ;;  %v1018_v0 = vrot.slane %v977_v4, %v2574_v29  ;;  %v1022_v59 = vrot.slane %v978_v1, %v2574_v29 }
 0x182   : > { %v893_v14 = vadd.f32 %v891_v61, %v877_v36  ;;  %v894_v5 = vadd.f32 %v892_v33, %v878_v54  ;;  %v3280_v42 = vmov 3   ;;  %v3281_v49 = vmov 1  }
 0x183   : > { %v931_v60 = vpop.permute.xlu1 %930  ;;  %v1023_v33 = vmul.f32 %v1018_v0, %v1013_v63  ;;  %v1024_v12 = vmul.f32 %v1022_v59, %v1013_v63 }
 0x184   : > { %v909_v6 = vadd.f32 %v907_v7, %v893_v14  ;;  %v910_v11 = vadd.f32 %v908_v24, %v894_v5  ;;  %v941_v41 = vmul.f32 %v936_v34, %v931_v60  ;;  %v942_v51 = vmul.f32 %v940_v8, %v931_v60 }
 0x185   : > { %v1034_v14 = vrot.slane %v977_v4, %v2597_v45  ;;  %v1038_v5 = vrot.slane %v978_v1, %v2597_v45  ;;  %v2814_v1 = vld [vmem:[%s3213_s4] sm:$0xf] }
 0x186   : > { %v927_v50 = vadd.f32 %v925_v62, %v909_v6  ;;  %v928_v58 = vadd.f32 %v926_v15, %v910_v11 }
 0x188   : > { %v943_v13 = vadd.f32 %v941_v41, %v927_v50  ;;  %v944_v17 = vadd.f32 %v942_v51, %v928_v58  ;;  %v947_v30 = vpop.permute.xlu1 %946 }
 0x189   : > { %v957_v21 = vmul.f32 %v952_v25, %v947_v30  ;;  %v958_v35 = vmul.f32 %v956_v44, %v947_v30 }
 0x18b   : > { %v959_v47 = vadd.f32 %v957_v21, %v943_v13  ;;  %v960_v18 = vadd.f32 %v958_v35, %v944_v17 }
 0x18d   : > { %v981_v2 = vpop.permute.xlu1 %980  ;;  %v975_v23 = vadd.f32 %v973_v26, %v959_v47  ;;  %v976_v31 = vadd.f32 %v974_v16, %v960_v18  ;;  %v3282_v47 = vmov 6   ;;  %v3283_v18 = vmov 2  }
 0x18e   : > { %v991_v52 = vmul.f32 %v986_v22, %v981_v2  ;;  %v992_v9 = vmul.f32 %v990_v38, %v981_v2  ;;  %v3284_v26 = vmov 9   ;;  %v3285_v16 = vmov 4  }
 0x18f   : > { %v3286_v2 = vmov 5   ;;  %v3287_v22 = vmov 10   ;;  %v3288_v38 = vmov 7  }
 0x190   : > { %v993_v39 = vadd.f32 %v991_v52, %v975_v23  ;;  %v994_v36 = vadd.f32 %v992_v9, %v976_v31  ;;  %v3289_v23 = vmov 8   ;;  %v3290_v31 = vmov 11  }
 0x192   : > { %v997_v37 = vpop.permute.xlu1 %996 }
 0x193   : > { %v1007_v54 = vmul.f32 %v1002_v10, %v997_v37  ;;  %v1008_v61 = vmul.f32 %v1006_v32, %v997_v37 }
 0x195   : > { %v1009_v53 = vadd.f32 %v1007_v54, %v993_v39  ;;  %v1010_v55 = vadd.f32 %v1008_v61, %v994_v36  ;;  %v3293_v61 = vmov 14  }
 0x197   : > { %v1029_v7 = vpop.permute.xlu1 %1028  ;;  %v1025_v24 = vadd.f32 %v1023_v33, %v1009_v53  ;;  %v1026_v60 = vadd.f32 %v1024_v12, %v1010_v55  ;;  %v3294_v33 = vmov 16   ;;  %v3295_v12 = vmov 15  }
 0x198   : > { %v1039_v34 = vmul.f32 %v1034_v14, %v1029_v7  ;;  %v1040_v8 = vmul.f32 %v1038_v5, %v1029_v7  ;;  %v3296_v53 = vmov 19   ;;  %v3297_v55 = vmov 17  }
 0x199   : > { %v3298_v14 = vmov 22   ;;  %v3300_v5 = vmov 28   ;;  %v3301_v7 = vmov 18  }
 0x19a   : > { %v1041_v62 = vadd.f32 %v1039_v34, %v1025_v24  ;;  %v1042_v15 = vadd.f32 %v1040_v8, %v1026_v60  ;;  %v3302_v24 = vmov 31   ;;  %v3303_v60 = vmov 20  }
 0x19b   : > { %v3304_v34 = vmov 34   ;;  %v3305_v8 = vmov 21  }
 0x19c   : > { %v1045_v6 = vmin.f32 %v1041_v62, 0.0  ;;  %v1046_v11 = vmin.f32 %v1042_v15, 0.0  ;;  %vm1043_vm0 = vcmp.gt.f32.partialorder %v1041_v62, 0.0  ;;  %vm1044_vm5 = vcmp.gt.f32.partialorder %v1042_v15, 0.0 }
 0x19e   : > { %v1047_v50 = vmul.f32 1.442695, %v1045_v6  ;;  %v1049_v58 = vmul.f32 1.442695, %v1046_v11  ;;  %v3308_v11 = vmov 24  }
 0x1a0   : > { %2032 = vpow2.f32 %v1047_v50  ;;  %v3309_v50 = vmov 26  }
 0x1a1   : > { %2034 = vpow2.f32 %v1049_v58 }
 0x1aa   : > { %v2033_v41 = vpop.eup %2032 }
 0x1ab   : > { %v2035_v51 = vpop.eup %2034  ;;  %v1859_v25 = vadd.f32 -1.0, %v2033_v41  ;;  %v3310_v41 = vmov 27  }
 0x1ac   : > { %v1860_v44 = vadd.f32 -1.0, %v2035_v51 }
 0x1ad   : > { %v1053_v13 = vmul.f32 1.6732632, %v1859_v25  ;;  %v3311_v25 = vmov 29  }
 0x1ae   : > { %v1054_v17 = vmul.f32 1.6732632, %v1860_v44 }
 0x1af   : > { %v1055_v30 = vsel %vm1043_vm0, %v1041_v62, %v1053_v13  ;;  %v3306_v62 = vmov 35  }
 0x1b0   : > { %v1056_v21 = vsel %vm1044_vm5, %v1042_v15, %v1054_v17  ;;  %v2801_v35 = vmul.f32 1.050701, %v1055_v30  ;;  %v3307_v15 = vmov 23   ;;  %v3312_v17 = vmov 30  }
 0x1b1   : > { %v2803_v4 = vmul.f32 1.050701, %v1056_v21 }
 0x1b2   : > { %1066 = vrot.lane.b32.xlu0 %v2801_v35, %s2142_s18 }
 0x1b3   : > { %1062 = vrot.lane.b32.xlu1 %v2803_v4, %s2142_s18 }
 0x1b6   : > { %1074 = vrot.lane.b32.xlu0 %v2803_v4, %s2141_s16 }
 0x1b7   : > { %1072 = vrot.lane.b32.xlu1 %v2801_v35, %s2141_s16  ;;  %s267_s16 = scalar_lea.vmem [#allocation5], %s1856_s28 }
 0x1b8   : > { %s1779_s18 = sshll.u32 %s267_s16, 4  ;;  %s3167_s18 = int_to_ptr.vmem [resolvable:$true] %s1779_s18 }
 0x1b9   : > { %s2071_s17 = scalar_lea.vmem %s3167_s18, 128 }
 0x1ba   : > { %1115 = vperm.xlu0 %1994, %v2814_v1   ;;  %p2072_p6 = scmp.ne.s32.totalorder %s3167_s18, %s2071_s17 }
 0x1bb   : > { %1087 = vperm.xlu1 %1993, %v1060_v43   ;;  %v3313_v43 = vmov 32  }
 0x1bc   : > { %p2073_p12 = pnand %p2072_p6, %p3316_p11 }
 0x1be   : > { %1997 = vset.pattern.permute.xlu0 %v3280_v42  ;;  %p2074_p13 = pneg %p2073_p12 }
 0x1bf   : > { %1995 = vset.pattern.permute.xlu1 %v3281_v49  ;;  %1163 = vperm.xlu0 %1997, %v2814_v1  }
 0x1c0   : > { %1131 = vperm.xlu1 %1995, %v2814_v1  }
 0x1c3   : > { %2000 = vset.pattern.permute.xlu0 %v3282_v47  ;;  %v3314_v47 = vmov 33  }
 0x1c4   : > { %1996 = vset.pattern.permute.xlu1 %v3283_v18  ;;  %1231 = vperm.xlu0 %2000, %v2814_v1  }
 0x1c5   : > { %1147 = vperm.xlu1 %1996, %v2814_v1  }
 0x1c8   : > { %2003 = vset.pattern.permute.xlu0 %v3284_v26 }
 0x1c9   : > { %1998 = vset.pattern.permute.xlu1 %v3285_v16  ;;  %1301 = vperm.xlu0 %2003, %v2814_v1  }
 0x1ca   : > { %1199 = vperm.xlu1 %1998, %v2814_v1  }
 0x1cd   : > { %1178 = vrot.lane.b32.xlu0 %v2803_v4, %s2150_s11 }
 0x1ce   : > { %1999 = vset.pattern.permute.xlu1 %v3286_v2  ;;  %2004 = vset.pattern.permute.xlu0 %v3287_v22 }
 0x1cf   : > { %1215 = vperm.xlu1 %1999, %v2814_v1  }
 0x1d1   : > { %1187 = vrot.lane.b32.xlu0 %v2801_v35, %s2148_s13 }
 0x1d3   : > { %2001 = vset.pattern.permute.xlu1 %v3288_v38 }
 0x1d4   : > { %1247 = vperm.xlu1 %2001, %v2814_v1  }
 0x1d8   : > { %2002 = vset.pattern.permute.xlu1 %v3289_v23 }
 0x1d9   : > { %1285 = vperm.xlu1 %2002, %v2814_v1  }
 0x1dd   : > { %1181 = vrot.lane.b32.xlu1 %v2801_v35, %s2150_s11 }
 0x1de   : > { %2005 = vset.pattern.permute.xlu1 %v3290_v31 }
 0x1e1   : > { %1189 = vrot.lane.b32.xlu1 %v2803_v4, %s2148_s13 }
 0x224   : > { %v1067_v52 = vpop.permute.xlu0 %1066 }
 0x225   : > { %v1063_v9 = vpop.permute.xlu1 %1062 }
 0x226   : > { %v1068_v63 = vsel %vm281_vm2, %v1067_v52, %v1063_v9  ;;  %v1071_v0 = vsel %vm281_vm2, %v1063_v9, %v1067_v52 }
 0x228   : > { %v1075_v10 = vpop.permute.xlu0 %1074 }
 0x229   : > { %v1073_v32 = vpop.permute.xlu1 %1072 }
 0x22a   : > { %v1076_v59 = vsel %vm291_vm1, %v1073_v32, %v1075_v10  ;;  %v1080_v37 = vsel %vm291_vm1, %v1075_v10, %v1073_v32 }
 0x22b   : > { %v2856_v39 = vsel %vm2401_vm3, %v1076_v59, %v1071_v0  ;;  %v2860_v36 = vsel %vm2405_vm4, %v1080_v37, %v1068_v63  ;;  %v2878_v54 = vsel %vm2434_vm6, %v1071_v0, %v1076_v59  ;;  %v2891_v40 = vsel %vm2453_vm7, %v1068_v63, %v1080_v37 }
 0x22c   : > { %1092 = vrot.lane.b32.xlu1 %v2860_v36, %s2150_s11  ;;  %1096 = vrot.lane.b32.xlu0 %v2856_v39, %s2150_s11 }
 0x230   : > { %1102 = vrot.lane.b32.xlu1 %v2856_v39, %s2148_s13  ;;  %1104 = vrot.lane.b32.xlu0 %v2860_v36, %s2148_s13 }
 0x234   : > { %1333 = vperm.xlu1 %2005, %v2814_v1   ;;  %1317 = vperm.xlu0 %2004, %v2814_v1  }
 0x238   : > { %2006 = vset.pattern.permute.xlu1 %v3291_v27  ;;  %2007 = vset.pattern.permute.xlu0 %v3292_v28 }
 0x239   : > { %1349 = vperm.xlu1 %2006, %v2814_v1   ;;  %1365 = vperm.xlu0 %2007, %v2814_v1   ;;  %v1116_v44 = vpop.permute.xlu0 %1115 }
 0x23a   : > { %v1088_v6 = vpop.permute.xlu1 %1087 }
 0x23d   : > { %2008 = vset.pattern.permute.xlu1 %v3293_v61  ;;  %1273 = vrot.lane.b32.xlu0 %v2878_v54, %s2148_s13 }
 0x23e   : > { %1381 = vperm.xlu1 %2008, %v2814_v1   ;;  %2010 = vset.pattern.permute.xlu0 %v3294_v33  ;;  %v1164_v30 = vpop.permute.xlu0 %1163 }
 0x23f   : > { %v1132_v58 = vpop.permute.xlu1 %1131 }
 0x241   : > { %1413 = vperm.xlu0 %2010, %v2814_v1  }
 0x242   : > { %2009 = vset.pattern.permute.xlu1 %v3295_v12 }
 0x243   : > { %1397 = vperm.xlu1 %2009, %v2814_v1   ;;  %v2937_v42 = vpop.permute.xlu0 %1231 }
 0x244   : > { %v1148_v51 = vpop.permute.xlu1 %1147 }
 0x245   : > { %2013 = vset.pattern.permute.xlu0 %v3296_v53 }
 0x246   : > { %1461 = vperm.xlu0 %2013, %v2814_v1  }
 0x247   : > { %1263 = vrot.lane.b32.xlu1 %v2891_v40, %s2150_s11 }
 0x248   : > { %2011 = vset.pattern.permute.xlu1 %v3297_v55  ;;  %v2944_v18 = vpop.permute.xlu0 %1301 }
 0x249   : > { %v2929_v13 = vpop.permute.xlu1 %1199 }
 0x24a   : > { %2016 = vset.pattern.permute.xlu0 %v3298_v14 }
 0x24b   : > { %1267 = vrot.lane.b32.xlu1 %v2878_v54, %s2150_s11  ;;  %1509 = vperm.xlu0 %2016, %v2814_v1  }
 0x24c   : > { %v1179_v16 = vpop.permute.xlu0 %1178 }
 0x24e   : > { %v2933_v21 = vpop.permute.xlu1 %1215 }
 0x24f   : > { %1275 = vrot.lane.b32.xlu1 %v2891_v40, %s2148_s13  ;;  %2019 = vset.pattern.permute.xlu0 %v3299_v46 }
 0x250   : > { %1559 = vperm.xlu0 %2019, %v2814_v1   ;;  %v1188_v22 = vpop.permute.xlu0 %1187 }
 0x253   : > { %1429 = vperm.xlu1 %2011, %v2814_v1   ;;  %v2939_v49 = vpop.permute.xlu1 %1247 }
 0x254   : > { %2022 = vset.pattern.permute.xlu0 %v3300_v5 }
 0x255   : > { %1609 = vperm.xlu0 %2022, %v2814_v1  }
 0x257   : > { %2012 = vset.pattern.permute.xlu1 %v3301_v7 }
 0x258   : > { %1445 = vperm.xlu1 %2012, %v2814_v1   ;;  %v2946_v26 = vpop.permute.xlu1 %1285 }
 0x259   : > { %2025 = vset.pattern.permute.xlu0 %v3302_v24 }
 0x25a   : > { %1657 = vperm.xlu0 %2025, %v2814_v1  }
 0x25c   : > { %2014 = vset.pattern.permute.xlu1 %v3303_v60  ;;  %v1182_v2 = vpop.permute.xlu1 %1181 }
 0x25d   : > { %1477 = vperm.xlu1 %2014, %v2814_v1  }
 0x25e   : > { %2028 = vset.pattern.permute.xlu0 %v3304_v34 }
 0x25f   : > { %1707 = vperm.xlu0 %2028, %v2814_v1  }
 0x260   : > { %v1190_v38 = vpop.permute.xlu1 %1189 }
 0x261   : > { %2015 = vset.pattern.permute.xlu1 %v3305_v8  ;;  %v2980_v34 = vsel %vm347_vm10, %v1188_v22, %v1190_v38  ;;  %v2983_v8 = vsel %vm347_vm10, %v1190_v38, %v1188_v22 }
 0x262   : > { %1493 = vperm.xlu1 %2015, %v2814_v1  }
 0x263   : > { %2030 = vset.pattern.permute.xlu0 %v3306_v62 }
 0x266   : > { %2017 = vset.pattern.permute.xlu1 %v3307_v15 }
 0x267   : > { %1525 = vperm.xlu1 %2017, %v2814_v1  }
 0x26b   : > { %2018 = vset.pattern.permute.xlu1 %v3308_v11  ;;  %v2986_v11 = vsel %vm337_vm9, %v1182_v2, %v1179_v16 }
 0x26c   : > { %1543 = vperm.xlu1 %2018, %v2814_v1  }
 0x270   : > { %2020 = vset.pattern.permute.xlu1 %v3309_v50 }
 0x271   : > { %1575 = vperm.xlu1 %2020, %v2814_v1  }
 0x275   : > { %2021 = vset.pattern.permute.xlu1 %v3310_v41 }
 0x276   : > { %1591 = vperm.xlu1 %2021, %v2814_v1  }
 0x27a   : > { %2023 = vset.pattern.permute.xlu1 %v3311_v25 }
 0x27b   : > { %1625 = vperm.xlu1 %2023, %v2814_v1  }
 0x27f   : > { %2024 = vset.pattern.permute.xlu1 %v3312_v17  ;;  %v1197_v17 = vsel %vm2545_vm12, %v2983_v8, %v2986_v11 }
 0x280   : > { %1641 = vperm.xlu1 %2024, %v2814_v1  }
 0x284   : > { %2026 = vset.pattern.permute.xlu1 %v3313_v43 }
 0x285   : > { %1675 = vperm.xlu1 %2026, %v2814_v1  }
 0x289   : > { %2027 = vset.pattern.permute.xlu1 %v3314_v47 }
 0x28a   : > { %1691 = vperm.xlu1 %2027, %v2814_v1  }
 0x28e   : > { %2029 = vset.pattern.permute.xlu1 %v3306_v62 }
 0x28f   : > { %1723 = vperm.xlu1 %2029, %v2814_v1  }
 0x29e   : > { %v1093_v23 = vpop.permute.xlu1 %1092  ;;  %v1097_v31 = vpop.permute.xlu0 %1096 }
 0x29f   : > { %v2956_v63 = vsel %vm337_vm9, %v1097_v31, %v1093_v23  ;;  %v2959_v0 = vsel %vm337_vm9, %v1093_v23, %v1097_v31 }
 0x2a2   : > { %v1103_v52 = vpop.permute.xlu1 %1102  ;;  %v1105_v9 = vpop.permute.xlu0 %1104 }
 0x2a3   : > { %v2950_v10 = vsel %vm347_vm10, %v1103_v52, %v1105_v9  ;;  %v2953_v32 = vsel %vm347_vm10, %v1105_v9, %v1103_v52 }
 0x2a4   : > { %v1111_v1 = vsel %vm2541_vm11, %v2950_v10, %v2959_v0  ;;  %v1112_v59 = vsel %vm2545_vm12, %v2953_v32, %v2956_v63 }
 0x2a5   : > { %v1121_v37 = vrot.slane %v1111_v1, %v2393_v19  ;;  %v1125_v27 = vrot.slane %v1112_v59, %v2393_v19  ;;  %v1137_v12 = vrot.slane %v1111_v1, %v2396_v20  ;;  %v1141_v53 = vrot.slane %v1112_v59, %v2396_v20 }
 0x2a6   : > { %v1153_v7 = vrot.slane %v1111_v1, %v2574_v29  ;;  %v1157_v24 = vrot.slane %v1112_v59, %v2574_v29  ;;  %v1169_v41 = vrot.slane %v1111_v1, %v2597_v45  ;;  %v1173_v25 = vrot.slane %v1112_v59, %v2597_v45 }
 0x2a7   : > { %v1126_v28 = vmul.f32 %v1121_v37, %v1116_v44  ;;  %v1127_v61 = vmul.f32 %v1125_v27, %v1116_v44  ;;  %v1142_v46 = vmul.f32 %v1137_v12, %v1132_v58  ;;  %v1143_v5 = vmul.f32 %v1141_v53, %v1132_v58 }
 0x2a8   : > { %v1158_v50 = vmul.f32 %v1153_v7, %v1148_v51  ;;  %v1159_v58 = vmul.f32 %v1157_v24, %v1148_v51  ;;  %v1174_v22 = vmul.f32 %v1169_v41, %v1164_v30  ;;  %v1175_v38 = vmul.f32 %v1173_v25, %v1164_v30 }
 0x2a9   : > { %v1128_v55 = vadd.f32 %v1126_v28, %v1088_v6  ;;  %v1129_v14 = vadd.f32 %v1127_v61, %v1088_v6  ;;  %v2989_v6 = vsel %vm337_vm9, %v1179_v16, %v1182_v2  ;;  %v1209_v2 = vrot.slane %v1197_v17, %v2393_v19 }
 0x2aa   : > { %v1196_v44 = vsel %vm2541_vm11, %v2980_v34, %v2989_v6  ;;  %v1225_v27 = vrot.slane %v1197_v17, %v2396_v20 }
 0x2ab   : > { %v1144_v62 = vadd.f32 %v1142_v46, %v1128_v55  ;;  %v1145_v15 = vadd.f32 %v1143_v5, %v1129_v14  ;;  %v1205_v51 = vrot.slane %v1196_v44, %v2393_v19  ;;  %v1211_v59 = vmul.f32 %v1209_v2, %v2929_v13 }
 0x2ac   : > { %v1221_v37 = vrot.slane %v1196_v44, %v2396_v20  ;;  %v1227_v30 = vmul.f32 %v1225_v27, %v2933_v21  ;;  %v1237_v55 = vrot.slane %v1196_v44, %v2574_v29  ;;  %v1241_v14 = vrot.slane %v1197_v17, %v2574_v29 }
 0x2ad   : > { %v1160_v47 = vadd.f32 %v1158_v50, %v1144_v62  ;;  %v1161_v16 = vadd.f32 %v1159_v58, %v1145_v15  ;;  %v1210_v1 = vmul.f32 %v1205_v51, %v2929_v13  ;;  %v1253_v15 = vrot.slane %v1196_v44, %v2597_v45 }
 0x2ae   : > { %v1226_v53 = vmul.f32 %v1221_v37, %v2933_v21  ;;  %v1242_v13 = vmul.f32 %v1237_v55, %v2937_v42  ;;  %v1243_v62 = vmul.f32 %v1241_v14, %v2937_v42  ;;  %v1257_v50 = vrot.slane %v1197_v17, %v2597_v45 }
 0x2af   : > { %v1176_v23 = vadd.f32 %v1174_v22, %v1160_v47  ;;  %v1177_v31 = vadd.f32 %v1175_v38, %v1161_v16  ;;  %v1258_v42 = vmul.f32 %v1253_v15, %v2939_v49  ;;  %v1355_v15 = vrot.slane %v2856_v39, %v2393_v19 }
 0x2b0   : > { %v1259_v44 = vmul.f32 %v1257_v50, %v2939_v49 }
 0x2b1   : > { %v1212_v28 = vadd.f32 %v1210_v1, %v1176_v23  ;;  %v1213_v61 = vadd.f32 %v1211_v59, %v1177_v31 }
 0x2b3   : > { %v2971_v33 = vpop.permute.xlu1 %1333  ;;  %v1318_v52 = vpop.permute.xlu0 %1317  ;;  %v1228_v5 = vadd.f32 %v1226_v53, %v1212_v28  ;;  %v1229_v7 = vadd.f32 %v1227_v30, %v1213_v61 }
 0x2b5   : > { %v1244_v25 = vadd.f32 %v1242_v13, %v1228_v5  ;;  %v1245_v21 = vadd.f32 %v1243_v62, %v1229_v7 }
 0x2b7   : > { %v1260_v59 = vadd.f32 %v1258_v42, %v1244_v25  ;;  %v1261_v49 = vadd.f32 %v1259_v44, %v1245_v21  ;;  %v1375_v21 = vrot.slane %v2860_v36, %v2396_v20 }
 0x2b8   : > { %v2977_v60 = vpop.permute.xlu1 %1349  ;;  %v1366_v46 = vpop.permute.xlu0 %1365 }
 0x2bc   : > { %v1274_v58 = vpop.permute.xlu0 %1273 }
 0x2bd   : > { %v3001_v43 = vpop.permute.xlu1 %1381 }
 0x2c2   : > { %v3005_v9 = vpop.permute.xlu1 %1397 }
 0x2c6   : > { %v1264_v12 = vpop.permute.xlu1 %1263 }
 0x2ca   : > { %v1268_v24 = vpop.permute.xlu1 %1267 }
 0x2cb   : > { %v3020_v47 = vsel %vm337_vm9, %v1268_v24, %v1264_v12  ;;  %v3023_v16 = vsel %vm337_vm9, %v1264_v12, %v1268_v24 }
 0x2ce   : > { %v1276_v41 = vpop.permute.xlu1 %1275 }
 0x2cf   : > { %v3026_v51 = vsel %vm347_vm10, %v1274_v58, %v1276_v41  ;;  %v3029_v2 = vsel %vm347_vm10, %v1276_v41, %v1274_v58 }
 0x2d0   : > { %v1282_v17 = vsel %vm2541_vm11, %v3026_v51, %v3023_v16  ;;  %v1283_v22 = vsel %vm2545_vm12, %v3029_v2, %v3020_v47 }
 0x2d1   : > { %v1291_v38 = vrot.slane %v1282_v17, %v2393_v19  ;;  %v1295_v23 = vrot.slane %v1283_v22, %v2393_v19  ;;  %v1307_v31 = vrot.slane %v1282_v17, %v2396_v20  ;;  %v1311_v1 = vrot.slane %v1283_v22, %v2396_v20 }
 0x2d2   : > { %v1430_v37 = vpop.permute.xlu1 %1429  ;;  %v1323_v28 = vrot.slane %v1282_v17, %v2574_v29  ;;  %v1327_v56 = vrot.slane %v1283_v22, %v2574_v29  ;;  %v1339_v61 = vrot.slane %v1282_v17, %v2597_v45  ;;  %v1343_v12 = vrot.slane %v1283_v22, %v2597_v45 }
 0x2d3   : > { %v1296_v27 = vmul.f32 %v1291_v38, %v2946_v26  ;;  %v1297_v57 = vmul.f32 %v1295_v23, %v2946_v26  ;;  %v1312_v55 = vmul.f32 %v1307_v31, %v2944_v18  ;;  %v1313_v14 = vmul.f32 %v1311_v1, %v2944_v18 }
 0x2d4   : > { %v1328_v24 = vmul.f32 %v1323_v28, %v1318_v52  ;;  %v1329_v13 = vmul.f32 %v1327_v56, %v1318_v52  ;;  %v1359_v26 = vrot.slane %v2860_v36, %v2393_v19  ;;  %v1344_v41 = vmul.f32 %v1339_v61, %v2971_v33 }
 0x2d5   : > { %v1298_v53 = vadd.f32 %v1296_v27, %v1260_v59  ;;  %v1299_v30 = vadd.f32 %v1297_v57, %v1261_v49  ;;  %v1345_v25 = vmul.f32 %v1343_v12, %v2971_v33  ;;  %v1371_v18 = vrot.slane %v2856_v39, %v2396_v20  ;;  %v1414_v12 = vpop.permute.xlu0 %1413 }
 0x2d6   : > { %v1360_v52 = vmul.f32 %v1355_v15, %v2977_v60  ;;  %v1361_v42 = vmul.f32 %v1359_v26, %v2977_v60  ;;  %v1391_v22 = vrot.slane %v2860_v36, %v2574_v29  ;;  %v1387_v38 = vrot.slane %v2856_v39, %v2574_v29 }
 0x2d7   : > { %v1314_v5 = vadd.f32 %v1312_v55, %v1298_v53  ;;  %v1315_v7 = vadd.f32 %v1313_v14, %v1299_v30  ;;  %v1446_v62 = vpop.permute.xlu1 %1445  ;;  %v1376_v33 = vmul.f32 %v1371_v18, %v1366_v46  ;;  %v1377_v31 = vmul.f32 %v1375_v21, %v1366_v46 }
 0x2d8   : > { %v1407_v49 = vrot.slane %v2860_v36, %v2597_v45  ;;  %v1403_v27 = vrot.slane %v2856_v39, %v2597_v45  ;;  %v1392_v60 = vmul.f32 %v1387_v38, %v3001_v43  ;;  %v1393_v57 = vmul.f32 %v1391_v22, %v3001_v43 }
 0x2d9   : > { %v1330_v50 = vadd.f32 %v1328_v24, %v1314_v5  ;;  %v1331_v58 = vadd.f32 %v1329_v13, %v1315_v7  ;;  %v1423_v61 = vrot.slane %v2803_v4, %v2393_v19  ;;  %v1419_v46 = vrot.slane %v2801_v35, %v2393_v19  ;;  %v1462_v18 = vpop.permute.xlu0 %1461 }
 0x2da   : > { %v1408_v53 = vmul.f32 %v1403_v27, %v3005_v9  ;;  %v1409_v36 = vmul.f32 %v1407_v49, %v3005_v9  ;;  %v1439_v14 = vrot.slane %v2803_v4, %v2396_v20  ;;  %v1435_v43 = vrot.slane %v2801_v35, %v2396_v20 }
 0x2db   : > { %v1346_v44 = vadd.f32 %v1344_v41, %v1330_v50  ;;  %v1347_v17 = vadd.f32 %v1345_v25, %v1331_v58  ;;  %v1424_v5 = vmul.f32 %v1419_v46, %v1414_v12  ;;  %v1425_v7 = vmul.f32 %v1423_v61, %v1414_v12 }
 0x2dc   : > { %v1478_v23 = vpop.permute.xlu1 %1477  ;;  %v1455_v26 = vrot.slane %v2803_v4, %v2574_v29  ;;  %v1451_v15 = vrot.slane %v2801_v35, %v2574_v29  ;;  %v1440_v58 = vmul.f32 %v1435_v43, %v1430_v37  ;;  %v1441_v41 = vmul.f32 %v1439_v14, %v1430_v37 }
 0x2dd   : > { %v1362_v1 = vadd.f32 %v1360_v52, %v1346_v44  ;;  %v1363_v59 = vadd.f32 %v1361_v42, %v1347_v17  ;;  %v1471_v25 = vrot.slane %v2803_v4, %v2597_v45  ;;  %v1467_v21 = vrot.slane %v2801_v35, %v2597_v45  ;;  %v1510_v46 = vpop.permute.xlu0 %1509 }
 0x2de   : > { %v1456_v17 = vmul.f32 %v1451_v15, %v1446_v62  ;;  %v1457_v22 = vmul.f32 %v1455_v26, %v1446_v62  ;;  %v1483_v38 = vrot.slane %v2878_v54, %v2393_v19  ;;  %v1499_v4 = vrot.slane %v2878_v54, %v2396_v20 }
 0x2df   : > { %v1378_v28 = vadd.f32 %v1376_v33, %v1362_v1  ;;  %v1379_v56 = vadd.f32 %v1377_v31, %v1363_v59  ;;  %v1487_v33 = vrot.slane %v2891_v40, %v2393_v19  ;;  %v1472_v31 = vmul.f32 %v1467_v21, %v1462_v18 }
 0x2e0   : > { %v1473_v37 = vmul.f32 %v1471_v25, %v1462_v18  ;;  %v1503_v35 = vrot.slane %v2891_v40, %v2396_v20  ;;  %v1515_v61 = vrot.slane %v2878_v54, %v2574_v29  ;;  %v1519_v12 = vrot.slane %v2891_v40, %v2574_v29 }
 0x2e1   : > { %v1394_v30 = vadd.f32 %v1392_v60, %v1378_v28  ;;  %v1395_v55 = vadd.f32 %v1393_v57, %v1379_v56  ;;  %v1494_v39 = vpop.permute.xlu1 %1493  ;;  %v1488_v60 = vmul.f32 %v1483_v38, %v1478_v23  ;;  %v1489_v62 = vmul.f32 %v1487_v33, %v1478_v23 }
 0x2e2   : > { %v1540_v28 = vsel %vm2733_vm14, %v2959_v0, %v2950_v10  ;;  %v1541_v56 = vsel %vm2737_vm15, %v2956_v63, %v2953_v32  ;;  %v1535_v10 = vrot.slane %v2891_v40, %v2597_v45  ;;  %v1520_v0 = vmul.f32 %v1515_v61, %v1510_v46 }
 0x2e3   : > { %v1410_v24 = vadd.f32 %v1408_v53, %v1394_v30  ;;  %v1411_v13 = vadd.f32 %v1409_v36, %v1395_v55  ;;  %v1504_v36 = vmul.f32 %v1499_v4, %v1494_v39  ;;  %v1505_v30 = vmul.f32 %v1503_v35, %v1494_v39 }
 0x2e4   : > { %v1531_v55 = vrot.slane %v2878_v54, %v2597_v45  ;;  %v1521_v14 = vmul.f32 %v1519_v12, %v1510_v46  ;;  %v1549_v43 = vrot.slane %v1540_v28, %v2393_v19  ;;  %v1565_v39 = vrot.slane %v1540_v28, %v2396_v20 }
 0x2e5   : > { %v1426_v9 = vadd.f32 %v1424_v5, %v1410_v24  ;;  %v1427_v50 = vadd.f32 %v1425_v7, %v1411_v13  ;;  %v1553_v5 = vrot.slane %v1541_v56, %v2393_v19  ;;  %v1569_v54 = vrot.slane %v1541_v56, %v2396_v20 }
 0x2e6   : > { %v1526_v52 = vpop.permute.xlu1 %1525  ;;  %v1606_v25 = vsel %vm2733_vm14, %v2989_v6, %v2980_v34  ;;  %v1607_v18 = vsel %vm2737_vm15, %v2986_v11, %v2983_v8  ;;  %v1581_v21 = vrot.slane %v1540_v28, %v2574_v29  ;;  %v1597_v33 = vrot.slane %v1540_v28, %v2597_v45 }
 0x2e7   : > { %v1442_v42 = vadd.f32 %v1440_v58, %v1426_v9  ;;  %v1443_v44 = vadd.f32 %v1441_v41, %v1427_v50  ;;  %v1536_v26 = vmul.f32 %v1531_v55, %v1526_v52  ;;  %v1537_v15 = vmul.f32 %v1535_v10, %v1526_v52  ;;  %v1560_v9 = vpop.permute.xlu0 %1559 }
 0x2e8   : > { %v1585_v52 = vrot.slane %v1541_v56, %v2574_v29  ;;  %v1619_v8 = vrot.slane %v1607_v18, %v2393_v19  ;;  %v1651_v55 = vrot.slane %v1607_v18, %v2574_v29 }
 0x2e9   : > { %v1458_v1 = vadd.f32 %v1456_v17, %v1442_v42  ;;  %v1459_v59 = vadd.f32 %v1457_v22, %v1443_v44  ;;  %v1570_v42 = vmul.f32 %v1565_v39, %v1560_v9  ;;  %v1571_v44 = vmul.f32 %v1569_v54, %v1560_v9 }
 0x2eb   : > { %v1474_v49 = vadd.f32 %v1472_v31, %v1458_v1  ;;  %v1475_v27 = vadd.f32 %v1473_v37, %v1459_v59  ;;  %v1544_v57 = vpop.permute.xlu1 %1543  ;;  %v1601_v31 = vrot.slane %v1541_v56, %v2597_v45  ;;  %v1615_v59 = vrot.slane %v1606_v25, %v2393_v19  ;;  %v1610_v11 = vpop.permute.xlu0 %1609 }
 0x2ec   : > { %v1554_v58 = vmul.f32 %v1549_v43, %v1544_v57  ;;  %v1555_v41 = vmul.f32 %v1553_v5, %v1544_v57  ;;  %v1635_v57 = vrot.slane %v1607_v18, %v2396_v20  ;;  %v1621_v56 = vmul.f32 %v1619_v8, %v1610_v11 }
 0x2ed   : > { %v1490_v53 = vadd.f32 %v1488_v60, %v1474_v49  ;;  %v1491_v23 = vadd.f32 %v1489_v62, %v1475_v27  ;;  %v1631_v62 = vrot.slane %v1606_v25, %v2396_v20  ;;  %v1620_v28 = vmul.f32 %v1615_v59, %v1610_v11 }
 0x2ee   : > { %v1672_v43 = vsel %vm2733_vm14, %v3023_v16, %v3026_v51  ;;  %v1673_v5 = vsel %vm2737_vm15, %v3020_v47, %v3029_v2 }
 0x2ef   : > { %v1506_v32 = vadd.f32 %v1504_v36, %v1490_v53  ;;  %v1507_v63 = vadd.f32 %v1505_v30, %v1491_v23  ;;  %v1647_v30 = vrot.slane %v1606_v25, %v2574_v29  ;;  %v1685_v3 = vrot.slane %v1673_v5, %v2393_v19 }
 0x2f0   : > { %v1576_v7 = vpop.permute.xlu1 %1575  ;;  %v1697_v48 = vrot.slane %v1672_v43, %v2396_v20  ;;  %v1701_v47 = vrot.slane %v1673_v5, %v2396_v20  ;;  %v1713_v2 = vrot.slane %v1672_v43, %v2574_v29 }
 0x2f1   : > { %v1522_v24 = vadd.f32 %v1520_v0, %v1506_v32  ;;  %v1523_v13 = vadd.f32 %v1521_v14, %v1507_v63  ;;  %v1586_v6 = vmul.f32 %v1581_v21, %v1576_v7  ;;  %v1587_v1 = vmul.f32 %v1585_v52, %v1576_v7  ;;  %v1658_v7 = vpop.permute.xlu0 %1657 }
 0x2f3   : > { %v1538_v50 = vadd.f32 %v1536_v26, %v1522_v24  ;;  %v1539_v40 = vadd.f32 %v1537_v15, %v1523_v13  ;;  %v1663_v24 = vrot.slane %v1606_v25, %v2597_v45  ;;  %v1667_v13 = vrot.slane %v1607_v18, %v2597_v45 }
 0x2f5   : > { %v1556_v17 = vadd.f32 %v1554_v58, %v1538_v50  ;;  %v1557_v22 = vadd.f32 %v1555_v41, %v1539_v40  ;;  %v1592_v38 = vpop.permute.xlu1 %1591  ;;  %v1668_v39 = vmul.f32 %v1663_v24, %v1658_v7  ;;  %v1669_v54 = vmul.f32 %v1667_v13, %v1658_v7  ;;  %v1708_v25 = vpop.permute.xlu0 %1707 }
 0x2f6   : > { %v1602_v49 = vmul.f32 %v1597_v33, %v1592_v38  ;;  %v1603_v27 = vmul.f32 %v1601_v31, %v1592_v38  ;;  %v1681_v50 = vrot.slane %v1672_v43, %v2393_v19  ;;  %v1717_v41 = vrot.slane %v1673_v5, %v2574_v29 }
 0x2f7   : > { %v1572_v37 = vadd.f32 %v1570_v42, %v1556_v17  ;;  %v1573_v34 = vadd.f32 %v1571_v44, %v1557_v22  ;;  %v1718_v19 = vmul.f32 %v1713_v2, %v1708_v25  ;;  %v1729_v33 = vrot.slane %v1672_v43, %v2597_v45 }
 0x2f8   : > { %v1719_v17 = vmul.f32 %v1717_v41, %v1708_v25  ;;  %v1733_v31 = vrot.slane %v1673_v5, %v2597_v45 }
 0x2f9   : > { %v1588_v4 = vadd.f32 %v1586_v6, %v1572_v37  ;;  %v1589_v35 = vadd.f32 %v1587_v1, %v1573_v34 }
 0x2fa   : > { %v1626_v60 = vpop.permute.xlu1 %1625 }
 0x2fb   : > { %v1604_v61 = vadd.f32 %v1602_v49, %v1588_v4  ;;  %v1605_v12 = vadd.f32 %v1603_v27, %v1589_v35  ;;  %v1636_v23 = vmul.f32 %v1631_v62, %v1626_v60  ;;  %v1637_v36 = vmul.f32 %v1635_v57, %v1626_v60  ;;  %v2040_v4 = vld [vmem:[%s2327_s19] sm:$0xff]  ;;  %s1869_s19 = sshll.u32 %s2237_s25, 7  ;;  %s2180_s25 = smov [#allocation5]  }
 0x2fc   : > { %v3315_v49 = vld [vmem:[#allocation8_spill] sm:$0xff]  ;;  %s3165_s14 = scalar_lea.hbm %s3215_s6, %s1869_s19  ;;  %s2075_s28 = sshll.u32 %s2180_s25, 4  ;;  %s2076_s28 = int_to_ptr.vmem [resolvable:$false] %s2075_s28 }
 0x2fd   : > { %v1622_v46 = vadd.f32 %v1620_v28, %v1604_v61  ;;  %v1623_v53 = vadd.f32 %v1621_v56, %v1605_v12  ;;  %s2077_s29 = scalar_lea.vmem %s2076_s28, 256  ;;  %p2078_p7 = scmp.lt.s32.totalorder %s3167_s18, %s2076_s28 }
 0x2fe   : > { %p2079_p10 = scmp.lt.s32.totalorder %s2077_s29, %s2071_s17 }
 0x2ff   : > { %v1638_v10 = vadd.f32 %v1636_v23, %v1622_v46  ;;  %v1639_v0 = vadd.f32 %v1637_v36, %v1623_v53  ;;  %v1642_v14 = vpop.permute.xlu1 %1641 }
 0x300   : > { %v1652_v32 = vmul.f32 %v1647_v30, %v1642_v14  ;;  %v1653_v63 = vmul.f32 %v1651_v55, %v1642_v14  ;;  %p2080_p2 = por %p2079_p10, %p2078_p7 }
 0x302   : > { %v1654_v26 = vadd.f32 %v1652_v32, %v1638_v10  ;;  %v1655_v15 = vadd.f32 %v1653_v63, %v1639_v0  ;;  %p2081_p4 = pnand %p2080_p2, %p2074_p13 }
 0x304   : > { %v1676_v9 = vpop.permute.xlu1 %1675  ;;  %v1670_v16 = vadd.f32 %v1668_v39, %v1654_v26  ;;  %v1671_v51 = vadd.f32 %v1669_v54, %v1655_v15 }
 0x305   : > { %v1686_v40 = vmul.f32 %v1681_v50, %v1676_v9  ;;  %v1687_v58 = vmul.f32 %v1685_v3, %v1676_v9 }
 0x307   : > { %v1688_v21 = vadd.f32 %v1686_v40, %v1670_v16  ;;  %v1689_v52 = vadd.f32 %v1687_v58, %v1671_v51 }
 0x309   : > { %v1692_v18 = vpop.permute.xlu1 %1691 }
 0x30a   : > { %v1702_v42 = vmul.f32 %v1697_v48, %v1692_v18  ;;  %v1703_v44 = vmul.f32 %v1701_v47, %v1692_v18 }
 0x30c   : > { %v1704_v22 = vadd.f32 %v1702_v42, %v1688_v21  ;;  %v1705_v38 = vadd.f32 %v1703_v44, %v1689_v52 }
 0x30e   : > { %v1724_v20 = vpop.permute.xlu1 %1723  ;;  %v1720_v37 = vadd.f32 %v1718_v19, %v1704_v22  ;;  %v1721_v34 = vadd.f32 %v1719_v17, %v1705_v38 }
 0x30f   : > { %v1734_v6 = vmul.f32 %v1729_v33, %v1724_v20  ;;  %v1735_v29 = vmul.f32 %v1733_v31, %v1724_v20 }
 0x311   : > { %v1736_v1 = vadd.f32 %v1734_v6, %v1720_v37  ;;  %v1737_v59 = vadd.f32 %v1735_v29, %v1721_v34 }
 0x313   : > { %v1738_v8 = vmul.f32 0.5, %v1736_v1  ;;  %v1739_v11 = vmul.f32 0.5, %v1737_v59 }
 0x315   : > { %v1741_v35 = vadd.f32 %v2040_v4, %v1738_v8  ;;  %v1742_v27 = vadd.f32 %v1739_v11, %v3315_v49 }
 0x317   : > { %v1745_v60 = vmin.f32 %v1741_v35, 0.0  ;;  %v1746_v62 = vmin.f32 %v1742_v27, 0.0  ;;  %vm1743_vm1 = vcmp.gt.f32.partialorder %v1741_v35, 0.0  ;;  %vm1744_vm2 = vcmp.gt.f32.partialorder %v1742_v27, 0.0 }
 0x319   : > { %v1747_v57 = vmul.f32 1.442695, %v1745_v60  ;;  %v1749_v28 = vmul.f32 1.442695, %v1746_v62 }
 0x31b   : > { %2036 = vpow2.f32 %v1747_v57 }
 0x31c   : > { %2038 = vpow2.f32 %v1749_v28 }
 0x325   : > { %v2037_v45 = vpop.eup %2036 }
 0x326   : > { %v2039_v56 = vpop.eup %2038  ;;  %v1861_v61 = vadd.f32 -1.0, %v2037_v45 }
 0x327   : > { %v1862_v12 = vadd.f32 -1.0, %v2039_v56 }
 0x328   : > { %v1753_v46 = vmul.f32 1.6732632, %v1861_v61 }
 0x329   : > { %v1754_v53 = vmul.f32 1.6732632, %v1862_v12 }
 0x32a   : > { %v1755_v23 = vsel %vm1743_vm1, %v1741_v35, %v1753_v46 }
 0x32b   : > { %v1756_v36 = vsel %vm1744_vm2, %v1742_v27, %v1754_v53  ;;  %v1757_v30 = vmul.f32 1.050701, %v1755_v23 }
 0x32c   : > { %v1758_v55 = vmul.f32 1.050701, %v1756_v36 }
 0x32e   : > { %v1761_v10 = vcombine.low %v1757_v30, %v1758_v55 }
 0x330   : > { %1763 = vst [vmem:[%s267_s16] sm:$0xff] %v1761_v10 }
 0x331   : > { %2084 = shalt.err (!%p2081_p4)
}
 0x332   : > { %s2085_s26 = scalar_lea.hbm %s3165_s14, 128  ;;  %s2089_s7 = scalar_lea.hbm %s3215_s6, 256 }
 0x333   : > { %p2086_p5 = scmp.ne.s32.totalorder %s3165_s14, %s2085_s26  ;;  %p2090_p0 = scmp.lt.u32.totalorder %s3165_s14, %s3215_s6 }
 0x334   : > { %p2091_p1 = scmp.lt.u32.totalorder %s2089_s7, %s2085_s26  ;;  %p2093_p6 = scmp.lt.u32.totalorder %s2085_s26, %s3165_s14 }
 0x335   : > { %p2087_p8 = pnand %p2086_p5, %p3316_p11 }
 0x336   : > { %p2092_p3 = por %p2091_p1, %p2090_p0 }
 0x337   : > { %p2088_p9 = pneg %p2087_p8 }
 0x338   : > { %p2094_p12 = por %p2093_p6, %p2092_p3 }
 0x33a   : > { %p2095_p13 = pnand %p2094_p12, %p2088_p9 }
 0x33c   : > { %2098 = shalt.err (!%p2095_p13)
}
 0x33d   : > { %1872 = dma.vmem_to_hbm [thread:$0]  (%p3316_p11), %s3167_s18, 128, %s3165_s14, %s1765_s15  }
 0x33e PF: > { %s1791_s16 = sand.u32 1, %s2125_s21   ;;  %p3317_p7 = scmp.ne.s32.totalorder %s3258_s10, 0 }
 0x33f   : > { %p3318_p10 = scmp.ge.s32.totalorder %s2137_s24, 2  ;;  %s1792_s13 = scalar_lea.sflag [#allocation4], %s1791_s16 }
 0x341   : > { %p1879_p2 = pnand %p3318_p10, %p3317_p7 }
 0x343   : > { %2120 = dma.done.wait (!%p1879_p2), %s1792_s13, 128  }
 0x344   : > { %2122 = vsyncadd (!%p1879_p2), %s1792_s13, 4294967168  ;;  %p19_p4 = scmp.ge.s32.totalorder %s2241_s27, 4   ;;  %s3319_s21 = smov %s2129_s22 }
 0x345   : > { %s3320_s22 = smov %s2133_s23  ;;  %s3321_s23 = smov %s2253_s30 }
 0x346   : > { %s3322_s24 = smov %s2241_s27  ;;  %21 = sbr.rel (!%p19_p4) target bundleno = 5 (0x5), region = 90 }
 0x34d   :  { %1797 = vsyncpa [#allocation3], 1 }
 0x34e   :  { %1799 = vsyncpa [#allocation3 + $0x1], 1 }
 0x34f   :  { %1800 = vsyncpa [#allocation4], 1 }
 0x350   :  { %1802 = vsyncpa [#allocation4 + $0x1], 1 }

</bundles_post_ra>
